<compile_context>
chip_gen: v7x
topology: tpu7x:2x2x1
jax: 0.10.0
libtpu: 0.0.40
codegen_flags: <defaults>
</compile_context>

<pallas_src>
import functools

import jax
import jax.numpy as jnp
from jax import lax
from jax.experimental import pallas as pl
from jax.experimental.pallas import tpu as pltpu

C_IN = 512     # pretrain_speech_encoder_dim
K = 5          # Conv1d kernel size
STRIDE = 2
PAD = 2
BN_EPS = 1e-5
HALO = 16      # reshaped halo rows carried from the next time tile


def _round_up(v, m):
    return ((v + m - 1) // m) * m


def _conv_bn_relu_kernel(x_ref, halo_ref, w01_ref, w23_ref, w4_ref, bias_ref, o_ref):
    """One (batch, time-tile) step of the stride-2 Conv1d + folded BN + ReLU.

    x_ref:    (1, To, 2*C_in)   bf16  reshaped rows r = [x_pad[2r], x_pad[2r+1]]
    halo_ref: (1, HALO, 2*C_in) bf16  first reshaped rows of the *next* tile
    w01_ref:  (2*C_in, C_out)   bf16  taps 0,1 stacked (BN-scaled)
    w23_ref:  (2*C_in, C_out)   bf16  taps 2,3 stacked (BN-scaled)
    w4_ref:   (C_in, C_out)     bf16  tap 4 (BN-scaled)   -- no zero padding
    bias_ref: (1, C_out)        f32   conv bias + BN shift, folded
    o_ref:    (1, To, C_out)    f32
    """
    t_o = x_ref.shape[1]
    r = x_ref[0]                  # (To, 2*C_in)
    h = halo_ref[0]               # (HALO, 2*C_in)
    bias = bias_ref[...]          # (1, C_out)

    # Tiny halo matmuls first: their results feed only the 2-row fix-up and hide
    # completely under the big MXU work below.
    h23 = jnp.dot(h, w23_ref[...], preferred_element_type=jnp.float32)
    h4 = jnp.dot(h[:, :C_IN], w4_ref[...], preferred_element_type=jnp.float32)

    a01 = jnp.dot(r, w01_ref[...], preferred_element_type=jnp.float32)
    a23 = jnp.dot(r, w23_ref[...], preferred_element_type=jnp.float32)
    a4 = jnp.dot(r[:, :C_IN], w4_ref[...], preferred_element_type=jnp.float32)

    # out[u] = a01[u] + a23[u+1] + a4[u+2] + bias ; row shifts on the f32 results via
    # pltpu.roll (XLU slot, overlaps MXU).
    b23 = pltpu.roll(a23, shift=t_o - 1, axis=0)      # b23[u] = a23[(u + 1) % To]
    b4 = pltpu.roll(a4, shift=t_o - 2, axis=0)        # b4[u]  = a4[(u + 2) % To]
    o_ref[0] = jnp.maximum(a01 + b23 + b4 + bias, 0.0).astype(o_ref.dtype)

    # The rolls wrapped rows To-2 / To-1; overwrite just those two rows from the halo
    # (static row stores -- no iota / full-tile selects).
    fix_m2 = a01[t_o - 2:t_o - 1] + a23[t_o - 1:t_o] + h4[0:1] + bias
    fix_m1 = a01[t_o - 1:t_o] + h23[0:1] + h4[1:2] + bias
    fix = jnp.concatenate([fix_m2, fix_m1], axis=0)           # (2, C_out)
    o_ref[0, t_o - 2:t_o] = jnp.maximum(fix, 0.0).astype(o_ref.dtype)


def conv_bn_relu_pallas(x_enc, conv_w, conv_b, gamma, beta, run_mean, run_var,
                        *, t_tile=1024):
    """x_enc: (B, C_in, T_enc) float (PyTorch NCW).  Returns (B, T_out, C_out) f32."""
    B, c_in, T_enc = x_enc.shape
    assert c_in == C_IN
    C_out = conv_w.shape[0]
    T_out = (T_enc + 2 * PAD - K) // STRIDE + 1

    # Tile choice: large tiles amortize grid-step overhead (v5e/v6e, MXU-bound);
    # make sure B * n_t >= 2 so both v7x TensorCores get work.
    t_tile = _round_up(t_tile, HALO)
    To = min(t_tile, _round_up(T_out, HALO))
    if B * pl.cdiv(T_out, To) < 2 and T_out > HALO:
        To = _round_up(pl.cdiv(T_out, 2), HALO)
    assert To % HALO == 0
    n_t = pl.cdiv(T_out, To)
    T_half = n_t * To + HALO                        # reshaped rows incl. trailing halo
    T_rows = 2 * T_half                             # padded rows at the conv input rate

    # ---- layout glue: transpose -> bf16 -> zero-pad (XLA fuses into one copy);
    #      the reshape into frame pairs is free (row-major). ----
    # TODO(synk): having the encoder emit (B, T, C) directly would drop this copy.
    xt = jnp.transpose(x_enc, (0, 2, 1)).astype(jnp.bfloat16)        # (B, T_enc, C_in)
    x_p = jnp.pad(xt, ((0, 0), (PAD, T_rows - PAD - T_enc), (0, 0)))
    x_r = x_p.reshape(B, T_half, 2 * c_in)          # row r = [x_pad[2r], x_pad[2r+1]]

    # ---- fold conv bias + eval-mode BN into the weights / a single bias vector ----
    scale = gamma * lax.rsqrt(run_var + BN_EPS)
    bias = (beta + (conv_b - run_mean) * scale).reshape(1, C_out).astype(jnp.float32)
    w_f = conv_w.astype(jnp.float32) * scale[:, None, None]          # (C_out, C_in, K)
    w_kic = jnp.transpose(w_f, (2, 1, 0))                            # (K, C_in, C_out)
    w01 = jnp.concatenate([w_kic[0], w_kic[1]], axis=0).astype(jnp.bfloat16)
    w23 = jnp.concatenate([w_kic[2], w_kic[3]], axis=0).astype(jnp.bfloat16)
    w4 = w_kic[4].astype(jnp.bfloat16)                               # (C_in, C_out)

    # NOTE: weights/bias are grid-invariant (constant index_map) so Pallas never
    # re-fetches them; the dead second pipeline buffer (~0.6 MB) is tolerated to keep
    # the call portable rather than relying on pl.Buffered(1) support.
    out = pl.pallas_call(
        _conv_bn_relu_kernel,
        out_shape=jax.ShapeDtypeStruct((B, T_out, C_out), jnp.float32),
        grid=(B, n_t),
        in_specs=[
            pl.BlockSpec((1, To, 2 * C_IN), lambda b, j: (b, j, 0)),
            pl.BlockSpec((1, HALO, 2 * C_IN),
                         lambda b, j: (b, (j + 1) * (To // HALO), 0)),
            pl.BlockSpec((2 * C_IN, C_out), lambda b, j: (0, 0)),
            pl.BlockSpec((2 * C_IN, C_out), lambda b, j: (0, 0)),
            pl.BlockSpec((C_IN, C_out), lambda b, j: (0, 0)),
            pl.BlockSpec((1, C_out), lambda b, j: (0, 0)),
        ],
        out_specs=pl.BlockSpec((1, To, C_out), lambda b, j: (b, j, 0)),
        compiler_params=pltpu.CompilerParams(
            dimension_semantics=("parallel", "parallel"),
            vmem_limit_bytes=32 * 1024 * 1024),
    )(x_r, x_r, w01, w23, w4, bias)
    return out                                      # (B, T_out, C_out) -- exact shape


def subsampling4_forward(x_enc, x_mask, labels, params, *, t_tile=1024):
    """Pallas equivalent of Subsampling4.forward, starting from the CAM++ output.

    x_enc:  (B, 512, T_enc) float32  -- CAM++ frame-level features (get_time_out=True)
    x_mask: (B, 1, T)       bool     -- original-frame-rate pad mask
    labels: (B, 4, T//4)             -- only its last dim (max_len) is used
    Returns (x, x_mask):  x (B, max_len, odim) float32,  x_mask (B, 1, max_len) bool.
    """
    y = conv_bn_relu_pallas(
        x_enc,
        params["conv_w"], params["conv_b"],
        params["bn_gamma"], params["bn_beta"],
        params["bn_mean"], params["bn_var"],
        t_tile=t_tile,
    )  # (B, T_out, odim) == x.transpose(1, 2) in the PyTorch code

    max_len = labels.shape[-1]
    diff = y.shape[1] - max_len
    assert -1 <= diff <= 2, f"label and ref_speech(mix speech) diff: {diff}"
    if diff == -1:
        y = jnp.pad(y, ((0, 0), (0, 1), (0, 0)))     # zero-pad missing frame (F.pad)
    y = y[:, :max_len, :]

    m = x_mask[:, :, 2::2][:, :, 2::2]
    gap = y.shape[1] - m.shape[-1]
    if gap > 0:
        m = jnp.pad(m, ((0, 0), (0, 0), (0, gap)))
    elif gap < 0:
        m = m[:, :, :y.shape[1]]
    return y, m


def _conv_bn_relu_ref(x_enc, conv_w, conv_b, gamma, beta, mean, var):
    """Pure-JAX reference (channel-first output) with bf16-rounded conv operands,
    matching the kernel's intentional bf16 quantization."""
    scale = gamma / jnp.sqrt(var + BN_EPS)
    shift = beta + (conv_b - mean) * scale
    w_f = (conv_w * scale[:, None, None]).astype(jnp.bfloat16).astype(jnp.float32)
    x_q = x_enc.astype(jnp.bfloat16).astype(jnp.float32)
    y = lax.conv_general_dilated(
        x_q, w_f, window_strides=(STRIDE,), padding=[(PAD, PAD)],
        dimension_numbers=("NCH", "OIH", "NCH"),
        precision=lax.Precision.HIGHEST)
    y = y + shift[None, :, None]
    return jnp.maximum(y, 0.0)    # (B, C_out, T_out)


if __name__ == "__main__":
    # Shape-consistent example:
    #   original time T = 128 -> CAM++ output T_enc = 64 -> stride-2 conv -> T_out = 32
    B = 2
    T = 128
    T_enc = T // 2
    ODIM = 192
    MAX_LEN = T // 4

    key = jax.random.PRNGKey(0)
    k_x, k_w, k_b, k_g, k_bt = jax.random.split(key, 5)

    x_enc = jax.random.normal(k_x, (B, C_IN, T_enc), dtype=jnp.float32)
    x_mask = jnp.ones((B, 1, T), dtype=jnp.bool_)
    labels = jnp.zeros((B, 4, MAX_LEN), dtype=jnp.float32)

    params = {
        "conv_w": jax.random.normal(k_w, (ODIM, C_IN, K), dtype=jnp.float32) * 0.02,
        "conv_b": jax.random.normal(k_b, (ODIM,), dtype=jnp.float32) * 0.1,
        "bn_gamma": 1.0 + 0.1 * jax.random.normal(k_g, (ODIM,), dtype=jnp.float32),
        "bn_beta": 0.1 * jax.random.normal(k_bt, (ODIM,), dtype=jnp.float32),
        "bn_mean": 0.05 * jnp.ones((ODIM,), dtype=jnp.float32),
        "bn_var": 1.3 * jnp.ones((ODIM,), dtype=jnp.float32),
    }

    fwd = jax.jit(functools.partial(subsampling4_forward, params=params))
    out_x, out_mask = fwd(x_enc, x_mask, labels)
    jax.block_until_ready((out_x, out_mask))

    assert out_x.shape == (B, MAX_LEN, ODIM), out_x.shape
    assert out_mask.shape == (B, 1, MAX_LEN), out_mask.shape

    # Correctness of the Pallas hot path against an independent lax.conv reference.
    ref = _conv_bn_relu_ref(
        x_enc, params["conv_w"], params["conv_b"],
        params["bn_gamma"], params["bn_beta"], params["bn_mean"], params["bn_var"])
    ref_x = jnp.transpose(ref, (0, 2, 1))[:, :MAX_LEN, :]
    err = float(jnp.max(jnp.abs(out_x - ref_x)))
    assert err < 2e-2, f"single-tile path max err {err}"

    # Multi-tile path: t_tile=16 -> 2 time tiles; exercises the cross-tile halo fix-up.
    tiled = jax.jit(functools.partial(conv_bn_relu_pallas, t_tile=16))(
        x_enc, params["conv_w"], params["conv_b"],
        params["bn_gamma"], params["bn_beta"], params["bn_mean"], params["bn_var"])
    jax.block_until_ready(tiled)
    err2 = float(jnp.max(jnp.abs(tiled[:, :MAX_LEN, :] - ref_x)))
    assert err2 < 2e-2, f"multi-tile path max err {err2}"

    print("KERNEL_OK")
</pallas_src>

<mosaic_0001>
module attributes {stable_mosaic.version = 11 : i64} {
  func.func @_conv_bn_relu_kernel(%arg0: i32, %arg1: i32, %arg2: memref<1x32x1024xbf16, #tpu.memory_space<vmem>>, %arg3: memref<1x16x1024xbf16, #tpu.memory_space<vmem>>, %arg4: memref<1024x192xbf16, #tpu.memory_space<vmem>>, %arg5: memref<1024x192xbf16, #tpu.memory_space<vmem>>, %arg6: memref<512x192xbf16, #tpu.memory_space<vmem>>, %arg7: memref<1x192xf32, #tpu.memory_space<vmem>>, %arg8: memref<1x32x192xf32, #tpu.memory_space<vmem>>) attributes {dimension_semantics = [#tpu.dimension_semantics<parallel>, #tpu.dimension_semantics<parallel>], iteration_bounds = array<i64: 2, 1>, scalar_prefetch = 0 : i64, scratch_operands = 0 : i64, tpu.core_type = #tpu.core_type<tc>, window_params = [{transform_indices = @transform_0, window_bounds = array<i64: 1, 32, 1024>}, {transform_indices = @transform_1, window_bounds = array<i64: 1, 16, 1024>}, {pipeline_mode = #tpu.pipeline_mode<synchronous>, transform_indices = @transform_2, window_bounds = array<i64: 1024, 192>}, {pipeline_mode = #tpu.pipeline_mode<synchronous>, transform_indices = @transform_3, window_bounds = array<i64: 1024, 192>}, {pipeline_mode = #tpu.pipeline_mode<synchronous>, transform_indices = @transform_4, window_bounds = array<i64: 512, 192>}, {pipeline_mode = #tpu.pipeline_mode<synchronous>, transform_indices = @transform_5, window_bounds = array<i64: 1, 192>}, {transform_indices = @transform_6, window_bounds = array<i64: 1, 32, 192>}]} {
    %c0 = arith.constant 0 : index
    %c0_0 = arith.constant 0 : index
    %c0_1 = arith.constant 0 : index
    %0 = vector.load %arg2[%c0, %c0_0, %c0_1] : memref<1x32x1024xbf16, #tpu.memory_space<vmem>>, vector<1x32x1024xbf16>
    %1 = vector.shape_cast %0 : vector<1x32x1024xbf16> to vector<32x1024xbf16>
    %c0_2 = arith.constant 0 : index
    %c0_3 = arith.constant 0 : index
    %c0_4 = arith.constant 0 : index
    %2 = vector.load %arg3[%c0_2, %c0_3, %c0_4] : memref<1x16x1024xbf16, #tpu.memory_space<vmem>>, vector<1x16x1024xbf16>
    %3 = vector.shape_cast %2 : vector<1x16x1024xbf16> to vector<16x1024xbf16>
    %c0_5 = arith.constant 0 : index
    %c0_6 = arith.constant 0 : index
    %4 = vector.load %arg7[%c0_5, %c0_6] : memref<1x192xf32, #tpu.memory_space<vmem>>, vector<1x192xf32>
    %c0_7 = arith.constant 0 : index
    %c0_8 = arith.constant 0 : index
    %5 = vector.load %arg5[%c0_7, %c0_8] : memref<1024x192xbf16, #tpu.memory_space<vmem>>, vector<1024x192xbf16>
    %cst = arith.constant dense<0.000000e+00> : vector<16x192xf32>
    %6 = tpu.matmul %3, %5, %cst {dimension_numbers = #tpu.dot_dimension_numbers<[1], [0], [0], [1], [0, 0, 1, 1], [], []>} : vector<16x1024xbf16>, vector<1024x192xbf16>, vector<16x192xf32> -> vector<16x192xf32>
    %7 = vector.extract_strided_slice %3 {offsets = [0, 0], sizes = [16, 512], strides = [1, 1]} : vector<16x1024xbf16> to vector<16x512xbf16>
    %c0_9 = arith.constant 0 : index
    %c0_10 = arith.constant 0 : index
    %8 = vector.load %arg6[%c0_9, %c0_10] : memref<512x192xbf16, #tpu.memory_space<vmem>>, vector<512x192xbf16>
    %cst_11 = arith.constant dense<0.000000e+00> : vector<16x192xf32>
    %9 = tpu.matmul %7, %8, %cst_11 {dimension_numbers = #tpu.dot_dimension_numbers<[1], [0], [0], [1], [0, 0, 1, 1], [], []>} : vector<16x512xbf16>, vector<512x192xbf16>, vector<16x192xf32> -> vector<16x192xf32>
    %c0_12 = arith.constant 0 : index
    %c0_13 = arith.constant 0 : index
    %10 = vector.load %arg4[%c0_12, %c0_13] : memref<1024x192xbf16, #tpu.memory_space<vmem>>, vector<1024x192xbf16>
    %cst_14 = arith.constant dense<0.000000e+00> : vector<32x192xf32>
    %11 = tpu.matmul %1, %10, %cst_14 {dimension_numbers = #tpu.dot_dimension_numbers<[1], [0], [0], [1], [0, 0, 1, 1], [], []>} : vector<32x1024xbf16>, vector<1024x192xbf16>, vector<32x192xf32> -> vector<32x192xf32>
    %c0_15 = arith.constant 0 : index
    %c0_16 = arith.constant 0 : index
    %12 = vector.load %arg5[%c0_15, %c0_16] : memref<1024x192xbf16, #tpu.memory_space<vmem>>, vector<1024x192xbf16>
    %cst_17 = arith.constant dense<0.000000e+00> : vector<32x192xf32>
    %13 = tpu.matmul %1, %12, %cst_17 {dimension_numbers = #tpu.dot_dimension_numbers<[1], [0], [0], [1], [0, 0, 1, 1], [], []>} : vector<32x1024xbf16>, vector<1024x192xbf16>, vector<32x192xf32> -> vector<32x192xf32>
    %14 = vector.extract_strided_slice %1 {offsets = [0, 0], sizes = [32, 512], strides = [1, 1]} : vector<32x1024xbf16> to vector<32x512xbf16>
    %c0_18 = arith.constant 0 : index
    %c0_19 = arith.constant 0 : index
    %15 = vector.load %arg6[%c0_18, %c0_19] : memref<512x192xbf16, #tpu.memory_space<vmem>>, vector<512x192xbf16>
    %cst_20 = arith.constant dense<0.000000e+00> : vector<32x192xf32>
    %16 = tpu.matmul %14, %15, %cst_20 {dimension_numbers = #tpu.dot_dimension_numbers<[1], [0], [0], [1], [0, 0, 1, 1], [], []>} : vector<32x512xbf16>, vector<512x192xbf16>, vector<32x192xf32> -> vector<32x192xf32>
    %c31_i32 = arith.constant 31 : i32
    %17 = tpu.dynamic_rotate %13 by %c31_i32 dim 0 : vector<32x192xf32>, i32 -> vector<32x192xf32>
    %c30_i32 = arith.constant 30 : i32
    %18 = tpu.dynamic_rotate %16 by %c30_i32 dim 0 : vector<32x192xf32>, i32 -> vector<32x192xf32>
    %19 = arith.addf %11, %17 : vector<32x192xf32>
    %20 = arith.addf %19, %18 : vector<32x192xf32>
    %21 = vector.broadcast %4 : vector<1x192xf32> to vector<32x192xf32>
    %22 = arith.addf %20, %21 : vector<32x192xf32>
    %cst_21 = arith.constant 0.000000e+00 : f32
    %23 = vector.broadcast %cst_21 : f32 to vector<32x192xf32>
    %24 = arith.maximumf %22, %23 : vector<32x192xf32>
    %c0_22 = arith.constant 0 : index
    %c0_23 = arith.constant 0 : index
    %c0_24 = arith.constant 0 : index
    %25 = vector.load %arg8[%c0_22, %c0_23, %c0_24] : memref<1x32x192xf32, #tpu.memory_space<vmem>>, vector<1x32x192xf32>
    %26 = vector.shape_cast %25 : vector<1x32x192xf32> to vector<32x192xf32>
    %27 = vector.shape_cast %24 : vector<32x192xf32> to vector<1x32x192xf32>
    tpu.vector_store %arg8[%c0_22, %c0_23, %c0_24], %27 {strides = array<i32>} : memref<1x32x192xf32, #tpu.memory_space<vmem>>, vector<1x32x192xf32>,
    %28 = vector.extract_strided_slice %11 {offsets = [30, 0], sizes = [1, 192], strides = [1, 1]} : vector<32x192xf32> to vector<1x192xf32>
    %29 = vector.extract_strided_slice %13 {offsets = [31, 0], sizes = [1, 192], strides = [1, 1]} : vector<32x192xf32> to vector<1x192xf32>
    %30 = arith.addf %28, %29 : vector<1x192xf32>
    %31 = vector.extract_strided_slice %9 {offsets = [0, 0], sizes = [1, 192], strides = [1, 1]} : vector<16x192xf32> to vector<1x192xf32>
    %32 = arith.addf %30, %31 : vector<1x192xf32>
    %33 = arith.addf %32, %4 : vector<1x192xf32>
    %34 = vector.extract_strided_slice %11 {offsets = [31, 0], sizes = [1, 192], strides = [1, 1]} : vector<32x192xf32> to vector<1x192xf32>
    %35 = vector.extract_strided_slice %6 {offsets = [0, 0], sizes = [1, 192], strides = [1, 1]} : vector<16x192xf32> to vector<1x192xf32>
    %36 = arith.addf %34, %35 : vector<1x192xf32>
    %37 = vector.extract_strided_slice %9 {offsets = [1, 0], sizes = [1, 192], strides = [1, 1]} : vector<16x192xf32> to vector<1x192xf32>
    %38 = arith.addf %36, %37 : vector<1x192xf32>
    %39 = arith.addf %38, %4 : vector<1x192xf32>
    %40 = tpu.concatenate %33, %39 in 0 : vector<1x192xf32>, vector<1x192xf32> -> vector<2x192xf32>
    %cst_25 = arith.constant 0.000000e+00 : f32
    %41 = vector.broadcast %cst_25 : f32 to vector<2x192xf32>
    %42 = arith.maximumf %40, %41 : vector<2x192xf32>
    %c0_26 = arith.constant 0 : index
    %c30 = arith.constant 30 : index
    %c0_27 = arith.constant 0 : index
    %43 = vector.load %arg8[%c0_26, %c30, %c0_27] : memref<1x32x192xf32, #tpu.memory_space<vmem>>, vector<1x2x192xf32>
    %44 = vector.shape_cast %43 : vector<1x2x192xf32> to vector<2x192xf32>
    %45 = vector.shape_cast %42 : vector<2x192xf32> to vector<1x2x192xf32>
    tpu.vector_store %arg8[%c0_26, %c30, %c0_27], %45 {strides = array<i32>} : memref<1x32x192xf32, #tpu.memory_space<vmem>>, vector<1x2x192xf32>,
    return
  }
  func.func @transform_0(%arg0: i32, %arg1: i32) -> (i32, i32, i32) {
    %c0_i32 = arith.constant 0 : i32
    %c0_i32_0 = arith.constant 0 : i32
    return %arg0, %arg1, %c0_i32 : i32, i32, i32
  }
  func.func @transform_1(%arg0: i32, %arg1: i32) -> (i32, i32, i32) {
    %c1_i32 = arith.constant 1 : i32
    %0 = arith.addi %arg1, %c1_i32 : i32
    %c2_i32 = arith.constant 2 : i32
    %1 = arith.muli %0, %c2_i32 : i32
    %c0_i32 = arith.constant 0 : i32
    %c0_i32_0 = arith.constant 0 : i32
    return %arg0, %1, %c0_i32 : i32, i32, i32
  }
  func.func @transform_2(%arg0: i32, %arg1: i32) -> (i32, i32) {
    %c0_i32 = arith.constant 0 : i32
    %c0_i32_0 = arith.constant 0 : i32
    %c0_i32_1 = arith.constant 0 : i32
    return %c0_i32, %c0_i32_0 : i32, i32
  }
  func.func @transform_3(%arg0: i32, %arg1: i32) -> (i32, i32) {
    %c0_i32 = arith.constant 0 : i32
    %c0_i32_0 = arith.constant 0 : i32
    %c0_i32_1 = arith.constant 0 : i32
    return %c0_i32, %c0_i32_0 : i32, i32
  }
  func.func @transform_4(%arg0: i32, %arg1: i32) -> (i32, i32) {
    %c0_i32 = arith.constant 0 : i32
    %c0_i32_0 = arith.constant 0 : i32
    %c0_i32_1 = arith.constant 0 : i32
    return %c0_i32, %c0_i32_0 : i32, i32
  }
  func.func @transform_5(%arg0: i32, %arg1: i32) -> (i32, i32) {
    %c0_i32 = arith.constant 0 : i32
    %c0_i32_0 = arith.constant 0 : i32
    %c0_i32_1 = arith.constant 0 : i32
    return %c0_i32, %c0_i32_0 : i32, i32
  }
  func.func @transform_6(%arg0: i32, %arg1: i32) -> (i32, i32, i32) {
    %c0_i32 = arith.constant 0 : i32
    %c0_i32_0 = arith.constant 0 : i32
    return %arg0, %arg1, %c0_i32 : i32, i32, i32
  }
}

</mosaic_0001>

<bundles_post_ra>
// kernel: subsampling4_forward.1
= control target key start
LH: loop header
LB: loop body
LE: loop exit
PB: predicated region body
PF: predicated region fallthrough
CT: control target
= control target key end

     0   :  { %11 = vsyncpa [#allocation3], 0  ;;  %s6712_s0 = inlined_call_operand.vmem [shape: bf16[2,48,1024], index: 0, kind: input, shape index: {}, may-alias: {0,1}]   ;;  %s6713_s1 = inlined_call_operand.vmem [shape: bf16[2,48,1024], index: 1, kind: input, shape index: {}, may-alias: {0,1}]   ;;  %s6714_s2 = inlined_call_operand.vmem [shape: bf16[1024,192], index: 2, kind: input, shape index: {}]   ;;  %s6715_s3 = inlined_call_operand.vmem [shape: bf16[1024,192], index: 3, kind: input, shape index: {}]   ;;  %s6716_s4 = inlined_call_operand.vmem [shape: bf16[512,192], index: 4, kind: input, shape index: {}]   ;;  %s6717_s5 = inlined_call_operand.vmem [shape: f32[1,192], index: 5, kind: input, shape index: {}]   ;;  %s6718_s6 = inlined_call_operand.hbm [shape: f32[2,32,192], index: 6, kind: output, shape index: {}]  }
   0x1   :  { %13 = vsyncpa [#allocation3 + $0x1], 0  ;;  %s4714_s21 = smov 0   ;;  %s4716_s22 = smov 0  }
   0x2   :  { %s4718_s23 = smov 0   ;;  %s4720_s24 = smov 0  }
   0x3   :  { %s4722_s25 = smov 0   ;;  %s4724_s26 = smov 0  }
   0x4 LB: > { %s3467_s27 = sadd.s32 4294967295, %s4674_s26   ;;  %s3468_s28 = sadd.s32 4294967294, %s4674_s26   ;;  %s4674_s26 = sphi %s4724_s26, %s19_s26   ;;  %s4670_s25 = sphi %s4722_s25, %s6725_s25   ;;  %s4666_s24 = sphi %s4720_s24, %s6724_s24   ;;  %s4662_s23 = sphi %s4718_s23, %s6723_s23   ;;  %s4658_s22 = sphi %s4716_s22, %s6722_s22   ;;  %s4654_s21 = sphi %s4714_s21, %s6721_s21  }
   0x5   : > { %s31_s29 = sadd.s32 1, %s4670_s25  ;;  %s184_s30 = sadd.s32 1, %s4662_s23 }
   0x6   : > { %p33_p0 = scmp.ge.s32.totalorder %s31_s29, 2  ;;  %p194_p1 = scmp.ne.s32.totalorder %s4662_s23, %s4658_s22 }
   0x7   : > { %p195_p2 = scmp.eq.s32.totalorder %s3467_s27, 1  ;;  %p200_p3 = scmp.ne.s32.totalorder %s4658_s22, %s4654_s21 }
   0x8   : > { %s6727_s29 = smov (%p33_p0, %s31_s29), 0  ;;  %p201_p5 = scmp.eq.s32.totalorder %s3468_s28, 1 }
   0x9   : > { %p4754_p4 = por %p195_p2, %p194_p1  ;;  %s179_s8 = ssub.s32 %s4670_s25, %s6727_s29 }
   0xa   : > { %p3471_p6 = scmp.ge.s32.totalorder %s4674_s26, 1  ;;  %p182_p7 = scmp.eq.s32.totalorder %s179_s8, 0 }
   0xb   : > { %p4761_p8 = por %p201_p5, %p200_p3  ;;  %p273_p9 = scmp.lt.s32.totalorder %s4674_s26, 3 }
   0xc   : > { %s4767_s10 = scalar_select %p182_p7, %s4662_s23, %s184_s30  }
   0xd   : > { %p274_p10 = pnand %p3471_p6, %p273_p9 }
   0xe   : > { %v3959_v0 = vld [vmem:[%s6715_s3 + $0x4] ss:$8 sps:$4 sm:$0xff] (!%p274_p10)   ;;  %p331_p11 = scmp.lt.s32.totalorder (!%p274_p10), %s4666_s24, 1  ;;  %v3963_v2 = vld [vmem:[%s6715_s3] ss:$8 sps:$4 sm:$0xff] (!%p274_p10)   ;;  %s322_s15 = sand.u32 (!%p274_p10), 1, %s4658_s22  }
   0xf   : > { %277 = sbr.rel (%p274_p10) target bundleno = 786 (0x312), region = 44  ;;  %v3961_v1 = vld [vmem:[%s6716_s4 + $0x4] ss:$8 sps:$4 sm:$0xff] (!%p274_p10)   ;;  %1195 = vmatprep.subr.bf16.mxu0 (!%p274_p10), %v3959_v0  ;;  %v3964_v3 = vld [vmem:[%s6716_s4] ss:$8 sps:$4 sm:$0xff] (!%p274_p10)   ;;  %s3472_s18 = sshll.u32 (!%p274_p10), %s322_s15, 6 }
  0x10   : > { %1743 = vmatprep.subr.bf16.mxu1 (!%p274_p10), %v3961_v1  ;;  %v3965_v4 = vld [vmem:[%s6715_s3 + $0x14] ss:$8 sps:$4 sm:$0xff] (!%p274_p10)   ;;  %1196 = vmatpush1.bf16.msra.mxu0 (!%p274_p10), %v3963_v2  ;;  %v3969_v6 = vld [vmem:[%s6715_s3 + $0x10] ss:$8 sps:$4 sm:$0xff] (!%p274_p10)   ;;  %v3971_v8 = vld [vmem:[%s6715_s3 + $0x24] ss:$8 sps:$4 sm:$0xff] (!%p274_p10)  }
  0x11   : > { %1744 = vmatpush1.bf16.msra.mxu1 (!%p274_p10), %v3964_v3  ;;  %v3967_v5 = vld [vmem:[%s6716_s4 + $0x14] ss:$8 sps:$4 sm:$0xff] (!%p274_p10)   ;;  %1197 = vmatprep.subr.bf16.mxu0 (!%p274_p10), %v3965_v4  ;;  %v3970_v7 = vld [vmem:[%s6716_s4 + $0x10] ss:$8 sps:$4 sm:$0xff] (!%p274_p10)   ;;  %v3973_v9 = vld [vmem:[%s6716_s4 + $0x24] ss:$8 sps:$4 sm:$0xff] (!%p274_p10)  }
  0x12   : > { %1745 = vmatprep.subr.bf16.mxu1 (!%p274_p10), %v3967_v5  ;;  %v3975_v10 = vld [vmem:[%s6715_s3 + $0x20] ss:$8 sps:$4 sm:$0xff] (!%p274_p10)   ;;  %v3977_v12 = vld [vmem:[%s6715_s3 + $0x34] ss:$8 sps:$4 sm:$0xff] (!%p274_p10)   ;;  %v3981_v14 = vld [vmem:[%s6715_s3 + $0x30] ss:$8 sps:$4 sm:$0xff] (!%p274_p10)  }
  0x13   : > { %v3976_v11 = vld [vmem:[%s6716_s4 + $0x20] ss:$8 sps:$4 sm:$0xff] (!%p274_p10)   ;;  %v3979_v13 = vld [vmem:[%s6716_s4 + $0x34] ss:$8 sps:$4 sm:$0xff] (!%p274_p10)   ;;  %v3982_v15 = vld [vmem:[%s6716_s4 + $0x30] ss:$8 sps:$4 sm:$0xff] (!%p274_p10)  }
  0x14   : > { %1198 = vmatpush1.bf16.msra.mxu0 (!%p274_p10), %v3969_v6  ;;  %v3983_v16 = vld [vmem:[%s6715_s3 + $0x44] ss:$8 sps:$4 sm:$0xff] (!%p274_p10)   ;;  %v3987_v18 = vld [vmem:[%s6715_s3 + $0x40] ss:$8 sps:$4 sm:$0xff] (!%p274_p10)   ;;  %v3989_v20 = vld [vmem:[%s6715_s3 + $0x54] ss:$8 sps:$4 sm:$0xff] (!%p274_p10)  }
  0x15   : > { %1746 = vmatpush1.bf16.msra.mxu1 (!%p274_p10), %v3970_v7  ;;  %1199 = vmatprep.subr.bf16.mxu0 (!%p274_p10), %v3971_v8  ;;  %v3985_v17 = vld [vmem:[%s6716_s4 + $0x44] ss:$8 sps:$4 sm:$0xff] (!%p274_p10)   ;;  %v3988_v19 = vld [vmem:[%s6716_s4 + $0x40] ss:$8 sps:$4 sm:$0xff] (!%p274_p10)   ;;  %v3991_v21 = vld [vmem:[%s6716_s4 + $0x54] ss:$8 sps:$4 sm:$0xff] (!%p274_p10)  }
  0x16   : > { %s4786_s27 = scalar_select %p331_p11, %s4666_s24, 1  ;;  %1747 = vmatprep.subr.bf16.mxu1 %v3973_v9  ;;  %v3993_v22 = vld [vmem:[%s6715_s3 + $0x50] ss:$8 sps:$4 sm:$0xff]   ;;  %v3995_v24 = vld [vmem:[%s6715_s3 + $0x64] ss:$8 sps:$4 sm:$0xff]   ;;  %vm3283_vm2 = vcmask 523264  }
  0x17   : > { %v3994_v23 = vld [vmem:[%s6716_s4 + $0x50] ss:$8 sps:$4 sm:$0xff]   ;;  %v3997_v25 = vld [vmem:[%s6716_s4 + $0x64] ss:$8 sps:$4 sm:$0xff]   ;;  %v3999_v26 = vld [vmem:[%s6715_s3 + $0x60] ss:$8 sps:$4 sm:$0xff]  }
  0x18   : > { %1200 = vmatpush1.bf16.msra.mxu0 %v3975_v10  ;;  %v4000_v27 = vld [vmem:[%s6716_s4 + $0x60] ss:$8 sps:$4 sm:$0xff]   ;;  %v4001_v28 = vld [vmem:[%s6715_s3 + $0x74] ss:$8 sps:$4 sm:$0xff]   ;;  %v4005_v30 = vld [vmem:[%s6715_s3 + $0x70] ss:$8 sps:$4 sm:$0xff]  }
  0x19   : > { %1748 = vmatpush1.bf16.msra.mxu1 %v3976_v11  ;;  %1201 = vmatprep.subr.bf16.mxu0 %v3977_v12  ;;  %v4003_v29 = vld [vmem:[%s6716_s4 + $0x74] ss:$8 sps:$4 sm:$0xff]   ;;  %v4006_v31 = vld [vmem:[%s6716_s4 + $0x70] ss:$8 sps:$4 sm:$0xff]   ;;  %v4007_v32 = vld [vmem:[%s6715_s3 + $0x84] ss:$8 sps:$4 sm:$0xff]  }
  0x1a   : > { %1749 = vmatprep.subr.bf16.mxu1 %v3979_v13  ;;  %v4009_v33 = vld [vmem:[%s6716_s4 + $0x84] ss:$8 sps:$4 sm:$0xff]   ;;  %v4011_v34 = vld [vmem:[%s6715_s3 + $0x80] ss:$8 sps:$4 sm:$0xff]   ;;  %v4013_v36 = vld [vmem:[%s6715_s3 + $0x94] ss:$8 sps:$4 sm:$0xff]  }
  0x1b   : > { %v4012_v35 = vld [vmem:[%s6716_s4 + $0x80] ss:$8 sps:$4 sm:$0xff]   ;;  %s3899_s20 = smul.u32 192, %s4786_s27  ;;  %v4015_v37 = vld [vmem:[%s6716_s4 + $0x94] ss:$8 sps:$4 sm:$0xff]   ;;  %vm3333_vm3 = vcmask 1040384  }
  0x1c   : > { %1202 = vmatpush1.bf16.msra.mxu0 %v3981_v14  ;;  %v4017_v38 = vld [vmem:[%s6715_s3 + $0x90] ss:$8 sps:$4 sm:$0xff]   ;;  %v4019_v40 = vld [vmem:[%s6715_s3 + $0xa4] ss:$8 sps:$4 sm:$0xff]   ;;  %v4023_v42 = vld [vmem:[%s6715_s3 + $0xa0] ss:$8 sps:$4 sm:$0xff]  }
  0x1d   : > { %1750 = vmatpush1.bf16.msra.mxu1 %v3982_v15  ;;  %1203 = vmatprep.subr.bf16.mxu0 %v3983_v16  ;;  %v4018_v39 = vld [vmem:[%s6716_s4 + $0x90] ss:$8 sps:$4 sm:$0xff]   ;;  %s3825_s16 = sadd.s32 128, %s3899_s20  ;;  %v4021_v41 = vld [vmem:[%s6716_s4 + $0xa4] ss:$8 sps:$4 sm:$0xff]   ;;  %s5194_s17 = scalar_lea.vmem %s6712_s0, %s3899_s20  ;;  %vm3345_vm4 = vcmask 523270  }
  0x1e   : > { %1751 = vmatprep.subr.bf16.mxu1 %v3985_v17  ;;  %v4024_v43 = vld [vmem:[%s6716_s4 + $0xa0] ss:$8 sps:$4 sm:$0xff]   ;;  %s4911_s13 = scalar_lea.vmem %s6713_s1, %s3825_s16  ;;  %v4025_v44 = vld [vmem:[%s6715_s3 + $0xb4] ss:$8 sps:$4 sm:$0xff]   ;;  %v4029_v48 = vld [vmem:[%s6715_s3 + $0xb0] ss:$8 sps:$4 sm:$0xff]  }
  0x1f   : > { %v4027_v45 = vld [vmem:[%s6716_s4 + $0xb4] ss:$8 sps:$4 sm:$0xff]   ;;  %v378_v46 = vld [vmem:[%s4911_s13] sm:$0xff]  ;;  %v4030_v49 = vld [vmem:[%s6716_s4 + $0xb0] ss:$8 sps:$4 sm:$0xff]   ;;  %s6599_s16 = scalar_lea.vmem [#allocation2], %s3472_s18 }
  0x20   : > { %1204 = vmatpush1.bf16.msra.mxu0 %v3987_v18  ;;  %v382_v47 = vld [vmem:[%s4911_s13 + $0x20] sm:$0xff]  ;;  %v4037_v55 = vld [vmem:[%s6715_s3 + $0xd4] ss:$8 sps:$4 sm:$0xff]   ;;  %v4041_v57 = vld [vmem:[%s6715_s3 + $0xd0] ss:$8 sps:$4 sm:$0xff]   ;;  %s3826_s19 = sshll.u32 %s4666_s24, 10 }
  0x21   : > { %1752 = vmatpush1.bf16.msra.mxu1 %v3988_v19  ;;  %1205 = vmatprep.subr.bf16.mxu0 %v3989_v20  ;;  %v3476_v50 = vcombine.high %v378_v46, %v382_v47  ;;  %v4031_v51 = vld [vmem:[%s6715_s3 + $0xc4] ss:$8 sps:$4 sm:$0xff]   ;;  %v4035_v53 = vld [vmem:[%s6715_s3 + $0xc0] ss:$8 sps:$4 sm:$0xff]   ;;  %v4039_v56 = vld [vmem:[%s6716_s4 + $0xd4] ss:$8 sps:$4 sm:$0xff]   ;;  %v3475_v5 = vcombine.low %v378_v46, %v382_v47  ;;  %s6659_s30 = scalar_lea.hbm %s6718_s6, %s3826_s19 }
  0x22   : > { %1753 = vmatprep.subr.bf16.mxu1 %v3991_v21  ;;  %v4033_v52 = vld [vmem:[%s6716_s4 + $0xc4] ss:$8 sps:$4 sm:$0xff]   ;;  %v4036_v54 = vld [vmem:[%s6716_s4 + $0xc0] ss:$8 sps:$4 sm:$0xff]   ;;  %v4042_v58 = vld [vmem:[%s6716_s4 + $0xd0] ss:$8 sps:$4 sm:$0xff]  }
  0x23   : > { %1227 = vmatprep.mubr.bf16.mxu0 %v3476_v50  ;;  %1775 = vmatprep.mubr.bf16.mxu1 %v3476_v50  ;;  %v4043_v59 = vld [vmem:[%s6715_s3 + $0xe4] ss:$8 sps:$4 sm:$0xff]   ;;  %v4047_v61 = vld [vmem:[%s6715_s3 + $0xe0] ss:$8 sps:$4 sm:$0xff]   ;;  %v4049_v63 = vld [vmem:[%s6715_s3 + $0xf4] ss:$8 sps:$4 sm:$0xff]  }
  0x24   : > { %1206 = vmatpush1.bf16.msra.mxu0 %v3993_v22  ;;  %v4045_v60 = vld [vmem:[%s6716_s4 + $0xe4] ss:$8 sps:$4 sm:$0xff]   ;;  %v4048_v62 = vld [vmem:[%s6716_s4 + $0xe0] ss:$8 sps:$4 sm:$0xff]   ;;  %v4051_v0 = vld [vmem:[%s6716_s4 + $0xf4] ss:$8 sps:$4 sm:$0xff]  }
  0x25   : > { %1754 = vmatpush1.bf16.msra.mxu1 %v3994_v23  ;;  %1207 = vmatprep.subr.bf16.mxu0 %v3995_v24  ;;  %v4053_v1 = vld [vmem:[%s6715_s3 + $0xf0] ss:$8 sps:$4 sm:$0xff]   ;;  %v4057_v3 = vld [vmem:[%s6715_s3 + $0x104] ss:$8 sps:$4 sm:$0xff]   ;;  %v4055_v6 = vld [vmem:[%s6715_s3 + $0x100] ss:$8 sps:$4 sm:$0xff]  }
  0x26   : > { %1755 = vmatprep.subr.bf16.mxu1 %v3997_v25  ;;  %v4054_v2 = vld [vmem:[%s6716_s4 + $0xf0] ss:$8 sps:$4 sm:$0xff]   ;;  %v4060_v4 = vld [vmem:[%s6716_s4 + $0x104] ss:$8 sps:$4 sm:$0xff]   ;;  %v4058_v7 = vld [vmem:[%s6716_s4 + $0x100] ss:$8 sps:$4 sm:$0xff]  }
  0x27   : > { %v4063_v8 = vld [vmem:[%s6715_s3 + $0x114] ss:$8 sps:$4 sm:$0xff]   ;;  %v4061_v10 = vld [vmem:[%s6715_s3 + $0x110] ss:$8 sps:$4 sm:$0xff]   ;;  %v4069_v12 = vld [vmem:[%s6715_s3 + $0x124] ss:$8 sps:$4 sm:$0xff]  }
  0x28   : > { %1208 = vmatpush1.bf16.msra.mxu0 %v3999_v26  ;;  %v4066_v9 = vld [vmem:[%s6716_s4 + $0x114] ss:$8 sps:$4 sm:$0xff]   ;;  %v4064_v11 = vld [vmem:[%s6716_s4 + $0x110] ss:$8 sps:$4 sm:$0xff]   ;;  %v4072_v13 = vld [vmem:[%s6716_s4 + $0x124] ss:$8 sps:$4 sm:$0xff]  }
  0x29   : > { %1756 = vmatpush1.bf16.msra.mxu1 %v4000_v27  ;;  %1209 = vmatprep.subr.bf16.mxu0 %v4001_v28  ;;  %v4067_v14 = vld [vmem:[%s6715_s3 + $0x120] ss:$8 sps:$4 sm:$0xff]   ;;  %v4075_v16 = vld [vmem:[%s6715_s3 + $0x134] ss:$8 sps:$4 sm:$0xff]   ;;  %v4073_v18 = vld [vmem:[%s6715_s3 + $0x130] ss:$8 sps:$4 sm:$0xff]  }
  0x2a   : > { %1757 = vmatprep.subr.bf16.mxu1 %v4003_v29  ;;  %v4070_v15 = vld [vmem:[%s6716_s4 + $0x120] ss:$8 sps:$4 sm:$0xff]   ;;  %v4078_v17 = vld [vmem:[%s6716_s4 + $0x134] ss:$8 sps:$4 sm:$0xff]   ;;  %v4076_v19 = vld [vmem:[%s6716_s4 + $0x130] ss:$8 sps:$4 sm:$0xff]  }
  0x2b   : > { %v4081_v20 = vld [vmem:[%s6715_s3 + $0x144] ss:$8 sps:$4 sm:$0xff]   ;;  %v4079_v22 = vld [vmem:[%s6715_s3 + $0x140] ss:$8 sps:$4 sm:$0xff]   ;;  %v4087_v24 = vld [vmem:[%s6715_s3 + $0x154] ss:$8 sps:$4 sm:$0xff]  }
  0x2c   : > { %1210 = vmatpush1.bf16.msra.mxu0 %v4005_v30  ;;  %v4084_v21 = vld [vmem:[%s6716_s4 + $0x144] ss:$8 sps:$4 sm:$0xff]   ;;  %v4082_v23 = vld [vmem:[%s6716_s4 + $0x140] ss:$8 sps:$4 sm:$0xff]   ;;  %v4090_v25 = vld [vmem:[%s6716_s4 + $0x154] ss:$8 sps:$4 sm:$0xff]  }
  0x2d   : > { %1758 = vmatpush1.bf16.msra.mxu1 %v4006_v31  ;;  %1211 = vmatprep.subr.bf16.mxu0 %v4007_v32  ;;  %v4085_v26 = vld [vmem:[%s6715_s3 + $0x150] ss:$8 sps:$4 sm:$0xff]   ;;  %v4093_v28 = vld [vmem:[%s6715_s3 + $0x164] ss:$8 sps:$4 sm:$0xff]   ;;  %v4091_v32 = vld [vmem:[%s6715_s3 + $0x160] ss:$8 sps:$4 sm:$0xff]  }
  0x2e   : > { %1759 = vmatprep.subr.bf16.mxu1 %v4009_v33  ;;  %v4088_v27 = vld [vmem:[%s6716_s4 + $0x150] ss:$8 sps:$4 sm:$0xff]   ;;  %v4096_v29 = vld [vmem:[%s6716_s4 + $0x164] ss:$8 sps:$4 sm:$0xff]   ;;  %v4094_v33 = vld [vmem:[%s6716_s4 + $0x160] ss:$8 sps:$4 sm:$0xff]  }
  0x2f   : > { %v5054_v30 = vld [vmem:[%s4911_s13 + $0x8] sm:$0xff]  ;;  %v4112_v46 = vld [vmem:[%s6716_s4 + $0x190] ss:$8 sps:$4 sm:$0xff]   ;;  %s3364_s28 = sshll.u32 %s6599_s16, 4  ;;  %s6666_s24 = scalar_lea.sflag [#allocation3], %s322_s15  ;;  %s6661_s28 = int_to_ptr.vmem [resolvable:$true] %s3364_s28 }
  0x30   : > { %1212 = vmatpush1.bf16.msra.mxu0 %v4011_v34  ;;  %v5057_v31 = vld [vmem:[%s4911_s13 + $0x28] sm:$0xff]  ;;  %s4596_s8 = scalar_lea.vmem %s6661_s28, 1024  ;;  %s4676_s11 = smov [#allocation2]  }
  0x31   : > { %1760 = vmatpush1.bf16.msra.mxu1 %v4012_v35  ;;  %1213 = vmatprep.subr.bf16.mxu0 %v4013_v36  ;;  %v3478_v34 = vcombine.high %v5054_v30, %v5057_v31  ;;  %v4099_v35 = vld [vmem:[%s6715_s3 + $0x174] ss:$8 sps:$4 sm:$0xff]   ;;  %v4117_v47 = vld [vmem:[%s6715_s3 + $0x1a4] ss:$8 sps:$4 sm:$0xff]   ;;  %v4118_v50 = vld [vmem:[%s6716_s4 + $0x1a0] ss:$8 sps:$4 sm:$0xff]   ;;  %p4597_p12 = scmp.ne.s32.totalorder %s6661_s28, %s4596_s8 }
  0x32   : > { %1761 = vmatprep.subr.bf16.mxu1 %v4015_v37  ;;  %v4102_v36 = vld [vmem:[%s6716_s4 + $0x174] ss:$8 sps:$4 sm:$0xff]   ;;  %v4097_v37 = vld [vmem:[%s6715_s3 + $0x170] ss:$8 sps:$4 sm:$0xff]   ;;  %s4600_s12 = sshll.u32 %s4676_s11, 4  ;;  %s4601_s12 = int_to_ptr.vmem [resolvable:$false] %s4600_s12 }
  0x33   : > { %p4598_p13 = pnand %p4597_p12, %p4754_p4  ;;  %p4603_p1 = scmp.lt.s32.totalorder %s6661_s28, %s4601_s12 }
  0x34   : > { %1214 = vmatpush1.bf16.msra.mxu0 %v4017_v38  ;;  %v4100_v38 = vld [vmem:[%s6716_s4 + $0x170] ss:$8 sps:$4 sm:$0xff]  }
  0x35   : > { %1762 = vmatpush1.bf16.msra.mxu1 %v4018_v39  ;;  %1215 = vmatprep.subr.bf16.mxu0 %v4019_v40  ;;  %v4105_v39 = vld [vmem:[%s6715_s3 + $0x184] ss:$8 sps:$4 sm:$0xff]   ;;  %p4599_p0 = pneg %p4598_p13 }
  0x36   : > { %1763 = vmatprep.subr.bf16.mxu1 %v4021_v41  ;;  %v4108_v40 = vld [vmem:[%s6716_s4 + $0x184] ss:$8 sps:$4 sm:$0xff]   ;;  %v4103_v41 = vld [vmem:[%s6715_s3 + $0x180] ss:$8 sps:$4 sm:$0xff]  }
  0x38   : > { %1216 = vmatpush1.bf16.msra.mxu0 %v4023_v42  ;;  %v4106_v42 = vld [vmem:[%s6716_s4 + $0x180] ss:$8 sps:$4 sm:$0xff]  }
  0x39   : > { %1764 = vmatpush1.bf16.msra.mxu1 %v4024_v43  ;;  %1217 = vmatprep.subr.bf16.mxu0 %v4025_v44  ;;  %v4111_v43 = vld [vmem:[%s6715_s3 + $0x194] ss:$8 sps:$4 sm:$0xff]  }
  0x3a   : > { %1765 = vmatprep.subr.bf16.mxu1 %v4027_v45  ;;  %v4114_v44 = vld [vmem:[%s6716_s4 + $0x194] ss:$8 sps:$4 sm:$0xff]   ;;  %v4109_v45 = vld [vmem:[%s6715_s3 + $0x190] ss:$8 sps:$4 sm:$0xff]  }
  0x3c   : > { %1218 = vmatpush1.bf16.msra.mxu0 %v4029_v48  ;;  %v4120_v48 = vld [vmem:[%s6716_s4 + $0x1a4] ss:$8 sps:$4 sm:$0xff]  }
  0x3d   : > { %1766 = vmatpush1.bf16.msra.mxu1 %v4030_v49  ;;  %1219 = vmatprep.subr.bf16.mxu0 %v4031_v51  ;;  %v4115_v49 = vld [vmem:[%s6715_s3 + $0x1a0] ss:$8 sps:$4 sm:$0xff]   ;;  %v4123_v51 = vld [vmem:[%s6715_s3 + $0x1b4] ss:$8 sps:$4 sm:$0xff]  }
  0x3e   : > { %1767 = vmatprep.subr.bf16.mxu1 %v4033_v52  ;;  %v4126_v52 = vld [vmem:[%s6716_s4 + $0x1b4] ss:$8 sps:$4 sm:$0xff]  }
  0x40   : > { %1220 = vmatpush1.bf16.msra.mxu0 %v4035_v53  ;;  %v4121_v53 = vld [vmem:[%s6715_s3 + $0x1b0] ss:$8 sps:$4 sm:$0xff]  }
  0x41   : > { %1768 = vmatpush1.bf16.msra.mxu1 %v4036_v54  ;;  %1221 = vmatprep.subr.bf16.mxu0 %v4037_v55  ;;  %v4124_v54 = vld [vmem:[%s6716_s4 + $0x1b0] ss:$8 sps:$4 sm:$0xff]   ;;  %v4129_v55 = vld [vmem:[%s6715_s3 + $0x1c4] ss:$8 sps:$4 sm:$0xff]  }
  0x42   : > { %1769 = vmatprep.subr.bf16.mxu1 %v4039_v56  ;;  %v4132_v56 = vld [vmem:[%s6716_s4 + $0x1c4] ss:$8 sps:$4 sm:$0xff]  }
  0x44   : > { %1222 = vmatpush1.bf16.msra.mxu0 %v4041_v57  ;;  %v4127_v57 = vld [vmem:[%s6715_s3 + $0x1c0] ss:$8 sps:$4 sm:$0xff]  }
  0x45   : > { %1770 = vmatpush1.bf16.msra.mxu1 %v4042_v58  ;;  %1223 = vmatprep.subr.bf16.mxu0 %v4043_v59  ;;  %v4130_v58 = vld [vmem:[%s6716_s4 + $0x1c0] ss:$8 sps:$4 sm:$0xff]   ;;  %v4135_v59 = vld [vmem:[%s6715_s3 + $0x1d4] ss:$8 sps:$4 sm:$0xff]  }
  0x46   : > { %1771 = vmatprep.subr.bf16.mxu1 %v4045_v60  ;;  %v4138_v60 = vld [vmem:[%s6716_s4 + $0x1d4] ss:$8 sps:$4 sm:$0xff]  }
  0x48   : > { %1224 = vmatpush1.bf16.msra.mxu0 %v4047_v61  ;;  %v4133_v61 = vld [vmem:[%s6715_s3 + $0x1d0] ss:$8 sps:$4 sm:$0xff]  }
  0x49   : > { %1772 = vmatpush1.bf16.msra.mxu1 %v4048_v62  ;;  %1225 = vmatprep.subr.bf16.mxu0 %v4049_v63  ;;  %v4136_v62 = vld [vmem:[%s6716_s4 + $0x1d0] ss:$8 sps:$4 sm:$0xff]   ;;  %v4141_v63 = vld [vmem:[%s6715_s3 + $0x1e4] ss:$8 sps:$4 sm:$0xff]  }
  0x4a   : > { %1773 = vmatprep.subr.bf16.mxu1 %v4051_v0  ;;  %v4144_v0 = vld [vmem:[%s6716_s4 + $0x1e4] ss:$8 sps:$4 sm:$0xff]  }
  0x4c   : > { %1226 = vmatpush1.bf16.msra.mxu0 %v4053_v1  ;;  %v4139_v1 = vld [vmem:[%s6715_s3 + $0x1e0] ss:$8 sps:$4 sm:$0xff]  }
  0x4d   : > { %1774 = vmatpush1.bf16.msra.mxu1 %v4054_v2  ;;  %1236 = vmatprep.subr.bf16.mxu0 %v4057_v3  ;;  %v4142_v2 = vld [vmem:[%s6716_s4 + $0x1e0] ss:$8 sps:$4 sm:$0xff]   ;;  %v4147_v3 = vld [vmem:[%s6715_s3 + $0x1f4] ss:$8 sps:$4 sm:$0xff]  }
  0x4e   : > { %1784 = vmatprep.subr.bf16.mxu1 %v4060_v4  ;;  %v4150_v4 = vld [vmem:[%s6716_s4 + $0x1f4] ss:$8 sps:$4 sm:$0xff]  }
  0x4f   : > { %1228 = vmatmul.mubr.bf16.vlgmr.msra.gmra.mrb[0].mxu0 %v3475_v5 }
  0x50   : > { %1776 = vmatmul.mubr.bf16.vlgmr.msra.gmra.mrb[0].mxu1 %v3475_v5  ;;  %1237 = vmatpush1.bf16.msra.mxu0 %v4055_v6  ;;  %v4145_v5 = vld [vmem:[%s6715_s3 + $0x1f0] ss:$8 sps:$4 sm:$0xff]  }
  0x51   : > { %1785 = vmatpush1.bf16.msra.mxu1 %v4058_v7  ;;  %1238 = vmatprep.subr.bf16.mxu0 %v4063_v8  ;;  %v4148_v6 = vld [vmem:[%s6716_s4 + $0x1f0] ss:$8 sps:$4 sm:$0xff]   ;;  %v4153_v7 = vld [vmem:[%s6715_s3 + $0x204] ss:$8 sps:$4 sm:$0xff]  }
  0x52   : > { %1786 = vmatprep.subr.bf16.mxu1 %v4066_v9  ;;  %1816 = vmatprep.mubr.bf16.mxu1 %v3478_v34  ;;  %v4156_v8 = vld [vmem:[%s6714_s2 + $0x4] ss:$8 sps:$4 sm:$0xff]   ;;  %v3477_v9 = vcombine.low %v5054_v30, %v5057_v31 }
  0x53   : > { %1268 = vmatprep.mubr.bf16.mxu0 %v3478_v34  ;;  %v4177_v30 = vld [vmem:[%s6715_s3 + $0x244] ss:$8 sps:$4 sm:$0xff]   ;;  %v4183_v34 = vld [vmem:[%s6715_s3 + $0x254] ss:$8 sps:$4 sm:$0xff]  }
  0x54   : > { %1239 = vmatpush1.bf16.msra.mxu0 %v4061_v10  ;;  %v4151_v10 = vld [vmem:[%s6715_s3 + $0x200] ss:$8 sps:$4 sm:$0xff]   ;;  %v4180_v31 = vld [vmem:[%s6714_s2 + $0x44] ss:$8 sps:$4 sm:$0xff]  }
  0x55   : > { %1787 = vmatpush1.bf16.msra.mxu1 %v4064_v11  ;;  %1240 = vmatprep.subr.bf16.mxu0 %v4069_v12  ;;  %v4154_v11 = vld [vmem:[%s6714_s2] ss:$8 sps:$4 sm:$0xff]   ;;  %v4159_v12 = vld [vmem:[%s6715_s3 + $0x214] ss:$8 sps:$4 sm:$0xff]  }
  0x56   : > { %1788 = vmatprep.subr.bf16.mxu1 %v4072_v13  ;;  %v4162_v13 = vld [vmem:[%s6714_s2 + $0x14] ss:$8 sps:$4 sm:$0xff]  }
  0x58   : > { %1241 = vmatpush1.bf16.msra.mxu0 %v4067_v14  ;;  %v5203_v14 = vld [vmem:[%s4911_s13 + $0x10] sm:$0xff] }
  0x59   : > { %1789 = vmatpush1.bf16.msra.mxu1 %v4070_v15  ;;  %1242 = vmatprep.subr.bf16.mxu0 %v4075_v16  ;;  %v5206_v15 = vld [vmem:[%s4911_s13 + $0x30] sm:$0xff] }
  0x5a   : > { %1790 = vmatprep.subr.bf16.mxu1 %v4078_v17  ;;  %v4157_v16 = vld [vmem:[%s6715_s3 + $0x210] ss:$8 sps:$4 sm:$0xff]   ;;  %v3480_v17 = vcombine.high %v5203_v14, %v5206_v15 }
  0x5c   : > { %1243 = vmatpush1.bf16.msra.mxu0 %v4073_v18  ;;  %v4160_v18 = vld [vmem:[%s6714_s2 + $0x10] ss:$8 sps:$4 sm:$0xff]  }
  0x5d   : > { %1791 = vmatpush1.bf16.msra.mxu1 %v4076_v19  ;;  %1244 = vmatprep.subr.bf16.mxu0 %v4081_v20  ;;  %v5217_v19 = vld [vmem:[%s5194_s17] sm:$0xff] }
  0x5e   : > { %1792 = vmatprep.subr.bf16.mxu1 %v4084_v21  ;;  %v5220_v20 = vld [vmem:[%s5194_s17 + $0x20] sm:$0xff] }
  0x5f   : > { %v4165_v21 = vld [vmem:[%s6715_s3 + $0x224] ss:$8 sps:$4 sm:$0xff]  }
  0x60   : > { %1245 = vmatpush1.bf16.msra.mxu0 %v4079_v22  ;;  %v5227_v22 = vcombine.high %v5217_v19, %v5220_v20 }
  0x61   : > { %1793 = vmatpush1.bf16.msra.mxu1 %v4082_v23  ;;  %1246 = vmatprep.subr.bf16.mxu0 %v4087_v24  ;;  %v4168_v23 = vld [vmem:[%s6714_s2 + $0x24] ss:$8 sps:$4 sm:$0xff]   ;;  %v4163_v24 = vld [vmem:[%s6715_s3 + $0x220] ss:$8 sps:$4 sm:$0xff]  }
  0x62   : > { %1794 = vmatprep.subr.bf16.mxu1 %v4090_v25  ;;  %v4166_v25 = vld [vmem:[%s6714_s2 + $0x20] ss:$8 sps:$4 sm:$0xff]  }
  0x64   : > { %1247 = vmatpush1.bf16.msra.mxu0 %v4085_v26  ;;  %v4171_v26 = vld [vmem:[%s6715_s3 + $0x234] ss:$8 sps:$4 sm:$0xff]  }
  0x65   : > { %1795 = vmatpush1.bf16.msra.mxu1 %v4088_v27  ;;  %1248 = vmatprep.subr.bf16.mxu0 %v4093_v28  ;;  %v4174_v27 = vld [vmem:[%s6714_s2 + $0x34] ss:$8 sps:$4 sm:$0xff]   ;;  %v4169_v28 = vld [vmem:[%s6715_s3 + $0x230] ss:$8 sps:$4 sm:$0xff]  }
  0x66   : > { %1796 = vmatprep.subr.bf16.mxu1 %v4096_v29  ;;  %v4172_v29 = vld [vmem:[%s6714_s2 + $0x30] ss:$8 sps:$4 sm:$0xff]  }
  0x68   : > { %1249 = vmatpush1.bf16.msra.mxu0 %v4091_v32  ;;  %v4175_v32 = vld [vmem:[%s6715_s3 + $0x240] ss:$8 sps:$4 sm:$0xff]  }
  0x69   : > { %1797 = vmatpush1.bf16.msra.mxu1 %v4094_v33  ;;  %1250 = vmatprep.subr.bf16.mxu0 %v4099_v35  ;;  %v4178_v33 = vld [vmem:[%s6714_s2 + $0x40] ss:$8 sps:$4 sm:$0xff]   ;;  %v4186_v35 = vld [vmem:[%s6714_s2 + $0x54] ss:$8 sps:$4 sm:$0xff]  }
  0x6a   : > { %1798 = vmatprep.subr.bf16.mxu1 %v4102_v36  ;;  %v4181_v36 = vld [vmem:[%s6715_s3 + $0x250] ss:$8 sps:$4 sm:$0xff]  }
  0x6c   : > { %1251 = vmatpush1.bf16.msra.mxu0 %v4097_v37  ;;  %v4184_v37 = vld [vmem:[%s6714_s2 + $0x50] ss:$8 sps:$4 sm:$0xff]  }
  0x6d   : > { %1799 = vmatpush1.bf16.msra.mxu1 %v4100_v38  ;;  %1252 = vmatprep.subr.bf16.mxu0 %v4105_v39  ;;  %v4189_v38 = vld [vmem:[%s6715_s3 + $0x264] ss:$8 sps:$4 sm:$0xff]  }
  0x6e   : > { %1800 = vmatprep.subr.bf16.mxu1 %v4108_v40  ;;  %v4192_v39 = vld [vmem:[%s6714_s2 + $0x64] ss:$8 sps:$4 sm:$0xff]   ;;  %v4187_v40 = vld [vmem:[%s6715_s3 + $0x260] ss:$8 sps:$4 sm:$0xff]  }
  0x70   : > { %1253 = vmatpush1.bf16.msra.mxu0 %v4103_v41  ;;  %v4190_v41 = vld [vmem:[%s6714_s2 + $0x60] ss:$8 sps:$4 sm:$0xff]  }
  0x71   : > { %1801 = vmatpush1.bf16.msra.mxu1 %v4106_v42  ;;  %1254 = vmatprep.subr.bf16.mxu0 %v4111_v43  ;;  %v4195_v42 = vld [vmem:[%s6715_s3 + $0x274] ss:$8 sps:$4 sm:$0xff]  }
  0x72   : > { %1802 = vmatprep.subr.bf16.mxu1 %v4114_v44  ;;  %v4198_v43 = vld [vmem:[%s6714_s2 + $0x74] ss:$8 sps:$4 sm:$0xff]   ;;  %v4193_v44 = vld [vmem:[%s6715_s3 + $0x270] ss:$8 sps:$4 sm:$0xff]  }
  0x74   : > { %1255 = vmatpush1.bf16.msra.mxu0 %v4109_v45  ;;  %v4196_v45 = vld [vmem:[%s6714_s2 + $0x70] ss:$8 sps:$4 sm:$0xff]  }
  0x75   : > { %1803 = vmatpush1.bf16.msra.mxu1 %v4112_v46  ;;  %1256 = vmatprep.subr.bf16.mxu0 %v4117_v47  ;;  %v4201_v46 = vld [vmem:[%s6715_s3 + $0x284] ss:$8 sps:$4 sm:$0xff]  }
  0x76   : > { %1804 = vmatprep.subr.bf16.mxu1 %v4120_v48  ;;  %v4204_v47 = vld [vmem:[%s6714_s2 + $0x84] ss:$8 sps:$4 sm:$0xff]   ;;  %v4199_v48 = vld [vmem:[%s6715_s3 + $0x280] ss:$8 sps:$4 sm:$0xff]  }
  0x78   : > { %1257 = vmatpush1.bf16.msra.mxu0 %v4115_v49  ;;  %v4202_v49 = vld [vmem:[%s6714_s2 + $0x80] ss:$8 sps:$4 sm:$0xff]  }
  0x79   : > { %1805 = vmatpush1.bf16.msra.mxu1 %v4118_v50  ;;  %1258 = vmatprep.subr.bf16.mxu0 %v4123_v51  ;;  %v4207_v50 = vld [vmem:[%s6715_s3 + $0x294] ss:$8 sps:$4 sm:$0xff]  }
  0x7a   : > { %1806 = vmatprep.subr.bf16.mxu1 %v4126_v52  ;;  %v4210_v51 = vld [vmem:[%s6714_s2 + $0x94] ss:$8 sps:$4 sm:$0xff]   ;;  %v4205_v52 = vld [vmem:[%s6715_s3 + $0x290] ss:$8 sps:$4 sm:$0xff]  }
  0x7c   : > { %1259 = vmatpush1.bf16.msra.mxu0 %v4121_v53  ;;  %v4208_v53 = vld [vmem:[%s6714_s2 + $0x90] ss:$8 sps:$4 sm:$0xff]  }
  0x7d   : > { %1807 = vmatpush1.bf16.msra.mxu1 %v4124_v54  ;;  %1260 = vmatprep.subr.bf16.mxu0 %v4129_v55  ;;  %v4213_v54 = vld [vmem:[%s6715_s3 + $0x2a4] ss:$8 sps:$4 sm:$0xff]  }
  0x7e   : > { %1808 = vmatprep.subr.bf16.mxu1 %v4132_v56  ;;  %v4216_v55 = vld [vmem:[%s6714_s2 + $0xa4] ss:$8 sps:$4 sm:$0xff]   ;;  %v4211_v56 = vld [vmem:[%s6715_s3 + $0x2a0] ss:$8 sps:$4 sm:$0xff]  }
  0x80   : > { %1261 = vmatpush1.bf16.msra.mxu0 %v4127_v57  ;;  %v4214_v57 = vld [vmem:[%s6714_s2 + $0xa0] ss:$8 sps:$4 sm:$0xff]  }
  0x81   : > { %1809 = vmatpush1.bf16.msra.mxu1 %v4130_v58  ;;  %1262 = vmatprep.subr.bf16.mxu0 %v4135_v59  ;;  %v4219_v58 = vld [vmem:[%s6715_s3 + $0x2b4] ss:$8 sps:$4 sm:$0xff]  }
  0x82   : > { %1810 = vmatprep.subr.bf16.mxu1 %v4138_v60  ;;  %v4222_v59 = vld [vmem:[%s6714_s2 + $0xb4] ss:$8 sps:$4 sm:$0xff]   ;;  %v4217_v60 = vld [vmem:[%s6715_s3 + $0x2b0] ss:$8 sps:$4 sm:$0xff]  }
  0x84   : > { %1263 = vmatpush1.bf16.msra.mxu0 %v4133_v61  ;;  %v4220_v61 = vld [vmem:[%s6714_s2 + $0xb0] ss:$8 sps:$4 sm:$0xff]  }
  0x85   : > { %1811 = vmatpush1.bf16.msra.mxu1 %v4136_v62  ;;  %1264 = vmatprep.subr.bf16.mxu0 %v4141_v63  ;;  %v4225_v62 = vld [vmem:[%s6715_s3 + $0x2c4] ss:$8 sps:$4 sm:$0xff]  }
  0x86   : > { %1812 = vmatprep.subr.bf16.mxu1 %v4144_v0  ;;  %v4228_v63 = vld [vmem:[%s6714_s2 + $0xc4] ss:$8 sps:$4 sm:$0xff]   ;;  %v4223_v0 = vld [vmem:[%s6715_s3 + $0x2c0] ss:$8 sps:$4 sm:$0xff]  }
  0x88   : > { %1265 = vmatpush1.bf16.msra.mxu0 %v4139_v1  ;;  %v4226_v1 = vld [vmem:[%s6714_s2 + $0xc0] ss:$8 sps:$4 sm:$0xff]  }
  0x89   : > { %1813 = vmatpush1.bf16.msra.mxu1 %v4142_v2  ;;  %1266 = vmatprep.subr.bf16.mxu0 %v4147_v3  ;;  %v4231_v2 = vld [vmem:[%s6715_s3 + $0x2d4] ss:$8 sps:$4 sm:$0xff]  }
  0x8a   : > { %1814 = vmatprep.subr.bf16.mxu1 %v4150_v4  ;;  %v4234_v3 = vld [vmem:[%s6714_s2 + $0xd4] ss:$8 sps:$4 sm:$0xff]   ;;  %v4229_v4 = vld [vmem:[%s6715_s3 + $0x2d0] ss:$8 sps:$4 sm:$0xff]  }
  0x8c   : > { %1267 = vmatpush1.bf16.msra.mxu0 %v4145_v5  ;;  %v4232_v5 = vld [vmem:[%s6714_s2 + $0xd0] ss:$8 sps:$4 sm:$0xff]  }
  0x8d   : > { %1815 = vmatpush1.bf16.msra.mxu1 %v4148_v6  ;;  %1277 = vmatprep.subr.bf16.mxu0 %v4153_v7  ;;  %v4237_v6 = vld [vmem:[%s6715_s3 + $0x2e4] ss:$8 sps:$4 sm:$0xff]  }
  0x8e   : > { %2673 = vmatprep.subr.bf16.mxu1 %v4156_v8  ;;  %v4240_v7 = vld [vmem:[%s6714_s2 + $0xe4] ss:$8 sps:$4 sm:$0xff]   ;;  %v5380_v8 = vld [vmem:[%s6715_s3 + $0x2e0] ss:$8 sps:$4 sm:$0xff]  }
  0x8f   : > { %1269 = vmatmul.mubr.bf16.vlgmr.msra.gmra.mrb[0].mxu0 %v3477_v9 }
  0x90   : > { %1817 = vmatmul.mubr.bf16.vlgmr.msra.gmra.mrb[0].mxu1 %v3477_v9  ;;  %1278 = vmatpush1.bf16.msra.mxu0 %v4151_v10  ;;  %v4238_v9 = vld [vmem:[%s6714_s2 + $0xe0] ss:$8 sps:$4 sm:$0xff]   ;;  %v5388_v10 = vld [vmem:[%s6715_s3 + $0x2f4] ss:$8 sps:$4 sm:$0xff]  }
  0x91   : > { %2674 = vmatpush1.bf16.msra.mxu1 %v4154_v11  ;;  %1279 = vmatprep.subr.bf16.mxu0 %v4159_v12  ;;  %v4246_v11 = vld [vmem:[%s6714_s2 + $0xf4] ss:$8 sps:$4 sm:$0xff]   ;;  %v5396_v12 = vld [vmem:[%s6715_s3 + $0x2f0] ss:$8 sps:$4 sm:$0xff]  }
  0x92   : > { %2675 = vmatprep.subr.bf16.mxu1 %v4162_v13  ;;  %1309 = vmatprep.mubr.bf16.mxu0 %v3480_v17  ;;  %v4244_v13 = vld [vmem:[%s6714_s2 + $0xf0] ss:$8 sps:$4 sm:$0xff]   ;;  %v4252_v17 = vld [vmem:[%s6714_s2 + $0x104] ss:$8 sps:$4 sm:$0xff]  }
  0x93   : > { %2705 = vmatprep.mubr.bf16.mxu1 %v5227_v22 }
  0x94   : > { %1280 = vmatpush1.bf16.msra.mxu0 %v4157_v16  ;;  %v5405_v16 = vld [vmem:[%s6715_s3 + $0x304] ss:$8 sps:$4 sm:$0xff]  }
  0x95   : > { %2676 = vmatpush1.bf16.msra.mxu1 %v4160_v18  ;;  %1281 = vmatprep.subr.bf16.mxu0 %v4165_v21  ;;  %v370_v18 = vld [vmem:[%s5194_s17 + $0x40] sm:$0xff] }
  0x96   : > { %2677 = vmatprep.subr.bf16.mxu1 %v4168_v23  ;;  %v374_v21 = vld [vmem:[%s5194_s17 + $0x60] sm:$0xff]  ;;  %v5414_v23 = vld [vmem:[%s4911_s13 + $0x18] sm:$0xff] }
  0x98   : > { %1282 = vmatpush1.bf16.msra.mxu0 %v4163_v24  ;;  %v3479_v24 = vcombine.low %v5203_v14, %v5206_v15  ;;  %v5438_v14 = vld [vmem:[%s6715_s3 + $0x314] ss:$8 sps:$4 sm:$0xff]  }
  0x99   : > { %2678 = vmatpush1.bf16.msra.mxu1 %v4166_v25  ;;  %1283 = vmatprep.subr.bf16.mxu0 %v4171_v26  ;;  %v5420_v25 = vcombine.low %v5217_v19, %v5220_v20  ;;  %v5423_v26 = vld [vmem:[%s4911_s13 + $0x38] sm:$0xff]  ;;  %v5443_v19 = vcombine.high %v370_v18, %v374_v21  ;;  %s4602_s13 = scalar_lea.vmem %s4601_s12, 2048 }
  0x9a   : > { %2679 = vmatprep.subr.bf16.mxu1 %v4174_v27  ;;  %v5429_v27 = vld [vmem:[%s6715_s3 + $0x300] ss:$8 sps:$4 sm:$0xff]   ;;  %v4258_v15 = vld [vmem:[%s6714_s2 + $0x114] ss:$8 sps:$4 sm:$0xff]   ;;  %v3482_v20 = vcombine.high %v5414_v23, %v5423_v26  ;;  %p4604_p2 = scmp.lt.s32.totalorder %s4602_s13, %s4596_s8 }
  0x9c   : > { %1284 = vmatpush1.bf16.msra.mxu0 %v4169_v28  ;;  %v4250_v28 = vld [vmem:[%s6714_s2 + $0x100] ss:$8 sps:$4 sm:$0xff]   ;;  %p4605_p3 = por %p4604_p2, %p4603_p1 }
  0x9d   : > { %2680 = vmatpush1.bf16.msra.mxu1 %v4172_v29  ;;  %1285 = vmatprep.subr.bf16.mxu0 %v4177_v30  ;;  %v5451_v29 = vld [vmem:[%s6715_s3 + $0x310] ss:$8 sps:$4 sm:$0xff]  }
  0x9e   : > { %2681 = vmatprep.subr.bf16.mxu1 %v4180_v31  ;;  %v4256_v30 = vld [vmem:[%s6714_s2 + $0x110] ss:$8 sps:$4 sm:$0xff]   ;;  %v5461_v31 = vld [vmem:[%s6715_s3 + $0x324] ss:$8 sps:$4 sm:$0xff]   ;;  %p4606_p5 = pnand %p4605_p3, %p4599_p0 }
  0xa0   : > { %1286 = vmatpush1.bf16.msra.mxu0 %v4175_v32  ;;  %v4264_v32 = vld [vmem:[%s6714_s2 + $0x124] ss:$8 sps:$4 sm:$0xff]  }
  0xa1   : > { %2682 = vmatpush1.bf16.msra.mxu1 %v4178_v33  ;;  %1287 = vmatprep.subr.bf16.mxu0 %v4183_v34  ;;  %v5468_v33 = vld [vmem:[%s5194_s17 + $0x8] sm:$0xff]  ;;  %v5470_v34 = vcombine.low %v370_v18, %v374_v21 }
  0xa2   : > { %2683 = vmatprep.subr.bf16.mxu1 %v4186_v35  ;;  %v5473_v35 = vld [vmem:[%s5194_s17 + $0x28] sm:$0xff] }
  0xa3   : > { %v4324_v18 = vld [vmem:[%s6714_s2 + $0x1c4] ss:$8 sps:$4 sm:$0xff]   ;;  %v5665_v21 = vld [vmem:[%s6715_s3 + $0x3c0] ss:$8 sps:$4 sm:$0xff]  }
  0xa4   : > { %1288 = vmatpush1.bf16.msra.mxu0 %v4181_v36  ;;  %v5479_v36 = vld [vmem:[%s6715_s3 + $0x320] ss:$8 sps:$4 sm:$0xff]  }
  0xa5   : > { %2684 = vmatpush1.bf16.msra.mxu1 %v4184_v37  ;;  %1289 = vmatprep.subr.bf16.mxu0 %v4189_v38  ;;  %v4262_v37 = vld [vmem:[%s6714_s2 + $0x120] ss:$8 sps:$4 sm:$0xff]   ;;  %v5488_v38 = vld [vmem:[%s6715_s3 + $0x334] ss:$8 sps:$4 sm:$0xff]  }
  0xa6   : > { %2685 = vmatprep.subr.bf16.mxu1 %v4192_v39  ;;  %v4270_v39 = vld [vmem:[%s6714_s2 + $0x134] ss:$8 sps:$4 sm:$0xff]  }
  0xa8   : > { %1290 = vmatpush1.bf16.msra.mxu0 %v4187_v40  ;;  %v5496_v40 = vld [vmem:[%s6715_s3 + $0x330] ss:$8 sps:$4 sm:$0xff]  }
  0xa9   : > { %2686 = vmatpush1.bf16.msra.mxu1 %v4190_v41  ;;  %1291 = vmatprep.subr.bf16.mxu0 %v4195_v42  ;;  %v4268_v41 = vld [vmem:[%s6714_s2 + $0x130] ss:$8 sps:$4 sm:$0xff]   ;;  %v5503_v42 = vcombine.high %v5468_v33, %v5473_v35 }
  0xaa   : > { %2687 = vmatprep.subr.bf16.mxu1 %v4198_v43  ;;  %v5510_v43 = vld [vmem:[%s6715_s3 + $0x344] ss:$8 sps:$4 sm:$0xff]  }
  0xac   : > { %1292 = vmatpush1.bf16.msra.mxu0 %v4193_v44  ;;  %v4276_v44 = vld [vmem:[%s6714_s2 + $0x144] ss:$8 sps:$4 sm:$0xff]  }
  0xad   : > { %2688 = vmatpush1.bf16.msra.mxu1 %v4196_v45  ;;  %1293 = vmatprep.subr.bf16.mxu0 %v4201_v46  ;;  %v5519_v45 = vld [vmem:[%s6715_s3 + $0x340] ss:$8 sps:$4 sm:$0xff]  }
  0xae   : > { %2689 = vmatprep.subr.bf16.mxu1 %v4204_v47  ;;  %v4274_v46 = vld [vmem:[%s6714_s2 + $0x140] ss:$8 sps:$4 sm:$0xff]   ;;  %v5529_v47 = vld [vmem:[%s6715_s3 + $0x354] ss:$8 sps:$4 sm:$0xff]  }
  0xb0   : > { %1294 = vmatpush1.bf16.msra.mxu0 %v4199_v48  ;;  %v4282_v48 = vld [vmem:[%s6714_s2 + $0x154] ss:$8 sps:$4 sm:$0xff]  }
  0xb1   : > { %2690 = vmatpush1.bf16.msra.mxu1 %v4202_v49  ;;  %1295 = vmatprep.subr.bf16.mxu0 %v4207_v50  ;;  %v5539_v49 = vld [vmem:[%s6715_s3 + $0x350] ss:$8 sps:$4 sm:$0xff]  }
  0xb2   : > { %2691 = vmatprep.subr.bf16.mxu1 %v4210_v51  ;;  %v4280_v50 = vld [vmem:[%s6714_s2 + $0x150] ss:$8 sps:$4 sm:$0xff]   ;;  %v5548_v51 = vld [vmem:[%s6715_s3 + $0x364] ss:$8 sps:$4 sm:$0xff]  }
  0xb4   : > { %1296 = vmatpush1.bf16.msra.mxu0 %v4205_v52  ;;  %v4288_v52 = vld [vmem:[%s6714_s2 + $0x164] ss:$8 sps:$4 sm:$0xff]  }
  0xb5   : > { %2692 = vmatpush1.bf16.msra.mxu1 %v4208_v53  ;;  %1297 = vmatprep.subr.bf16.mxu0 %v4213_v54  ;;  %v5557_v53 = vld [vmem:[%s6715_s3 + $0x360] ss:$8 sps:$4 sm:$0xff]  }
  0xb6   : > { %2693 = vmatprep.subr.bf16.mxu1 %v4216_v55  ;;  %v4286_v54 = vld [vmem:[%s6714_s2 + $0x160] ss:$8 sps:$4 sm:$0xff]   ;;  %v5566_v55 = vld [vmem:[%s6715_s3 + $0x374] ss:$8 sps:$4 sm:$0xff]  }
  0xb8   : > { %1298 = vmatpush1.bf16.msra.mxu0 %v4211_v56  ;;  %v4294_v56 = vld [vmem:[%s6714_s2 + $0x174] ss:$8 sps:$4 sm:$0xff]  }
  0xb9   : > { %2694 = vmatpush1.bf16.msra.mxu1 %v4214_v57  ;;  %1299 = vmatprep.subr.bf16.mxu0 %v4219_v58  ;;  %v5575_v57 = vld [vmem:[%s6715_s3 + $0x370] ss:$8 sps:$4 sm:$0xff]  }
  0xba   : > { %2695 = vmatprep.subr.bf16.mxu1 %v4222_v59  ;;  %v4292_v58 = vld [vmem:[%s6714_s2 + $0x170] ss:$8 sps:$4 sm:$0xff]   ;;  %v5584_v59 = vld [vmem:[%s6715_s3 + $0x384] ss:$8 sps:$4 sm:$0xff]  }
  0xbc   : > { %1300 = vmatpush1.bf16.msra.mxu0 %v4217_v60  ;;  %v4300_v60 = vld [vmem:[%s6714_s2 + $0x184] ss:$8 sps:$4 sm:$0xff]  }
  0xbd   : > { %2696 = vmatpush1.bf16.msra.mxu1 %v4220_v61  ;;  %1301 = vmatprep.subr.bf16.mxu0 %v4225_v62  ;;  %v5593_v61 = vld [vmem:[%s6715_s3 + $0x380] ss:$8 sps:$4 sm:$0xff]  }
  0xbe   : > { %2697 = vmatprep.subr.bf16.mxu1 %v4228_v63  ;;  %v4298_v62 = vld [vmem:[%s6714_s2 + $0x180] ss:$8 sps:$4 sm:$0xff]   ;;  %v5602_v63 = vld [vmem:[%s6715_s3 + $0x394] ss:$8 sps:$4 sm:$0xff]  }
  0xc0   : > { %1302 = vmatpush1.bf16.msra.mxu0 %v4223_v0  ;;  %v4306_v0 = vld [vmem:[%s6714_s2 + $0x194] ss:$8 sps:$4 sm:$0xff]  }
  0xc1   : > { %2698 = vmatpush1.bf16.msra.mxu1 %v4226_v1  ;;  %1303 = vmatprep.subr.bf16.mxu0 %v4231_v2  ;;  %v5611_v1 = vld [vmem:[%s6715_s3 + $0x390] ss:$8 sps:$4 sm:$0xff]  }
  0xc2   : > { %2699 = vmatprep.subr.bf16.mxu1 %v4234_v3  ;;  %v4304_v2 = vld [vmem:[%s6714_s2 + $0x190] ss:$8 sps:$4 sm:$0xff]   ;;  %v5620_v3 = vld [vmem:[%s6715_s3 + $0x3a4] ss:$8 sps:$4 sm:$0xff]  }
  0xc4   : > { %1304 = vmatpush1.bf16.msra.mxu0 %v4229_v4  ;;  %v4312_v4 = vld [vmem:[%s6714_s2 + $0x1a4] ss:$8 sps:$4 sm:$0xff]  }
  0xc5   : > { %2700 = vmatpush1.bf16.msra.mxu1 %v4232_v5  ;;  %1305 = vmatprep.subr.bf16.mxu0 %v4237_v6  ;;  %v5629_v5 = vld [vmem:[%s6715_s3 + $0x3a0] ss:$8 sps:$4 sm:$0xff]  }
  0xc6   : > { %2701 = vmatprep.subr.bf16.mxu1 %v4240_v7  ;;  %v4310_v6 = vld [vmem:[%s6714_s2 + $0x1a0] ss:$8 sps:$4 sm:$0xff]   ;;  %v5638_v7 = vld [vmem:[%s6715_s3 + $0x3b4] ss:$8 sps:$4 sm:$0xff]  }
  0xc8   : > { %1306 = vmatpush1.bf16.msra.mxu0 %v5380_v8 }
  0xc9   : > { %2702 = vmatpush1.bf16.msra.mxu1 %v4238_v9  ;;  %1307 = vmatprep.subr.bf16.mxu0 %v5388_v10  ;;  %v4318_v9 = vld [vmem:[%s6714_s2 + $0x1b4] ss:$8 sps:$4 sm:$0xff]  }
  0xca   : > { %2703 = vmatprep.subr.bf16.mxu1 %v4246_v11  ;;  %v5647_v11 = vld [vmem:[%s6715_s3 + $0x3b0] ss:$8 sps:$4 sm:$0xff]  }
  0xcc   : > { %1308 = vmatpush1.bf16.msra.mxu0 %v5396_v12 }
  0xcd   : > { %2704 = vmatpush1.bf16.msra.mxu1 %v4244_v13  ;;  %1318 = vmatprep.subr.bf16.mxu0 %v5405_v16  ;;  %v4316_v13 = vld [vmem:[%s6714_s2 + $0x1b0] ss:$8 sps:$4 sm:$0xff]  }
  0xce   : > { %2726 = vmatprep.subr.bf16.mxu1 %v4252_v17  ;;  %v5656_v17 = vld [vmem:[%s6715_s3 + $0x3c4] ss:$8 sps:$4 sm:$0xff]  }
  0xcf   : > { %1310 = vmatmul.mubr.bf16.vlgmr.msra.gmra.mrb[0].mxu0 %v3479_v24  ;;  %v4322_v24 = vld [vmem:[%s6714_s2 + $0x1c0] ss:$8 sps:$4 sm:$0xff]  }
  0xd0   : > { %2706 = vmatmul.mubr.bf16.vlgmr.msra.gmra.mrb[4].mxu1 %v5420_v25  ;;  %1319 = vmatpush1.bf16.msra.mxu0 %v5429_v27 }
  0xd1   : > { %2727 = vmatpush1.bf16.msra.mxu1 %v4250_v28  ;;  %1320 = vmatprep.subr.bf16.mxu0 %v5438_v14  ;;  %v5674_v28 = vld [vmem:[%s6715_s3 + $0x3d4] ss:$8 sps:$4 sm:$0xff]  }
  0xd2   : > { %2728 = vmatprep.subr.bf16.mxu1 %v4258_v15  ;;  %2715 = vmatprep.mubr.bf16.mxu1 %v5443_v19  ;;  %v4330_v15 = vld [vmem:[%s6714_s2 + $0x1d4] ss:$8 sps:$4 sm:$0xff]  }
  0xd3   : > { %1350 = vmatprep.mubr.bf16.mxu0 %v3482_v20  ;;  %v5683_v20 = vld [vmem:[%s6715_s3 + $0x3d0] ss:$8 sps:$4 sm:$0xff]  }
  0xd4   : > { %1321 = vmatpush1.bf16.msra.mxu0 %v5451_v29 }
  0xd5   : > { %2729 = vmatpush1.bf16.msra.mxu1 %v4256_v30  ;;  %1322 = vmatprep.subr.bf16.mxu0 %v5461_v31  ;;  %v4328_v30 = vld [vmem:[%s6714_s2 + $0x1d0] ss:$8 sps:$4 sm:$0xff]  }
  0xd6   : > { %2730 = vmatprep.subr.bf16.mxu1 %v4264_v32  ;;  %v5692_v32 = vld [vmem:[%s6715_s3 + $0x3e4] ss:$8 sps:$4 sm:$0xff]  }
  0xd8   : > { %2716 = vmatmul.mubr.bf16.gmra.mrb[8].mxu1 %v5470_v34  ;;  %1323 = vmatpush1.bf16.msra.mxu0 %v5479_v36 }
  0xd9   : > { %2731 = vmatpush1.bf16.msra.mxu1 %v4262_v37  ;;  %1324 = vmatprep.subr.bf16.mxu0 %v5488_v38  ;;  %v4336_v37 = vld [vmem:[%s6714_s2 + $0x1e4] ss:$8 sps:$4 sm:$0xff]  }
  0xda   : > { %2732 = vmatprep.subr.bf16.mxu1 %v4270_v39  ;;  %2758 = vmatprep.mubr.bf16.mxu1 %v5503_v42  ;;  %v5701_v39 = vld [vmem:[%s6715_s3 + $0x3e0] ss:$8 sps:$4 sm:$0xff]  }
  0xdc   : > { %1325 = vmatpush1.bf16.msra.mxu0 %v5496_v40 }
  0xdd   : > { %2733 = vmatpush1.bf16.msra.mxu1 %v4268_v41  ;;  %1326 = vmatprep.subr.bf16.mxu0 %v5510_v43  ;;  %v4334_v41 = vld [vmem:[%s6714_s2 + $0x1e0] ss:$8 sps:$4 sm:$0xff]  }
  0xde   : > { %2734 = vmatprep.subr.bf16.mxu1 %v4276_v44  ;;  %v5710_v44 = vld [vmem:[%s6715_s3 + $0x3f4] ss:$8 sps:$4 sm:$0xff]  }
  0xe0   : > { %1327 = vmatpush1.bf16.msra.mxu0 %v5519_v45 }
  0xe1   : > { %2735 = vmatpush1.bf16.msra.mxu1 %v4274_v46  ;;  %1328 = vmatprep.subr.bf16.mxu0 %v5529_v47  ;;  %v4342_v46 = vld [vmem:[%s6714_s2 + $0x1f4] ss:$8 sps:$4 sm:$0xff]  }
  0xe2   : > { %2736 = vmatprep.subr.bf16.mxu1 %v4282_v48  ;;  %v5719_v48 = vld [vmem:[%s6715_s3 + $0x3f0] ss:$8 sps:$4 sm:$0xff]  }
  0xe4   : > { %1329 = vmatpush1.bf16.msra.mxu0 %v5539_v49 }
  0xe5   : > { %2737 = vmatpush1.bf16.msra.mxu1 %v4280_v50  ;;  %1330 = vmatprep.subr.bf16.mxu0 %v5548_v51  ;;  %v4340_v50 = vld [vmem:[%s6714_s2 + $0x1f0] ss:$8 sps:$4 sm:$0xff]  }
  0xe6   : > { %2738 = vmatprep.subr.bf16.mxu1 %v4288_v52  ;;  %v4345_v52 = vld [vmem:[%s6714_s2 + $0x204] ss:$8 sps:$4 sm:$0xff]  }
  0xe8   : > { %1331 = vmatpush1.bf16.msra.mxu0 %v5557_v53 }
  0xe9   : > { %2739 = vmatpush1.bf16.msra.mxu1 %v4286_v54  ;;  %1332 = vmatprep.subr.bf16.mxu0 %v5566_v55  ;;  %v3481_v54 = vcombine.low %v5414_v23, %v5423_v26  ;;  %v4348_v23 = vld [vmem:[%s6714_s2 + $0x214] ss:$8 sps:$4 sm:$0xff]  }
  0xea   : > { %2740 = vmatprep.subr.bf16.mxu1 %v4294_v56  ;;  %v5732_v56 = vcombine.low %v5468_v33, %v5473_v35  ;;  %v4440_v33 = vld [vmem:[%s6715_s3] ss:$8 sps:$4 sm:$0xff]   ;;  %v4346_v35 = vld [vmem:[%s6714_s2 + $0x210] ss:$8 sps:$4 sm:$0xff]  }
  0xec   : > { %1333 = vmatpush1.bf16.msra.mxu0 %v5575_v57 }
  0xed   : > { %2741 = vmatpush1.bf16.msra.mxu1 %v4292_v58  ;;  %1334 = vmatprep.subr.bf16.mxu0 %v5584_v59  ;;  %v371_v58 = vld [vmem:[%s5194_s17 + $0x48] sm:$0xff] }
  0xee   : > { %2742 = vmatprep.subr.bf16.mxu1 %v4300_v60  ;;  %v375_v60 = vld [vmem:[%s5194_s17 + $0x68] sm:$0xff] }
  0xef   : > { %v5746_v26 = vcombine.high %v371_v58, %v375_v60 }
  0xf0   : > { %1335 = vmatpush1.bf16.msra.mxu0 %v5593_v61 }
  0xf1   : > { %2743 = vmatpush1.bf16.msra.mxu1 %v4298_v62  ;;  %1336 = vmatprep.subr.bf16.mxu0 %v5602_v63  ;;  %v4343_v62 = vld [vmem:[%s6714_s2 + $0x200] ss:$8 sps:$4 sm:$0xff]  }
  0xf2   : > { %2744 = vmatprep.subr.bf16.mxu1 %v4306_v0  ;;  %v4439_v0 = vld [vmem:[%s6715_s3 + $0x4] ss:$8 sps:$4 sm:$0xff]  }
  0xf4   : > { %1337 = vmatpush1.bf16.msra.mxu0 %v5611_v1 }
  0xf5   : > { %2745 = vmatpush1.bf16.msra.mxu1 %v4304_v2  ;;  %1338 = vmatprep.subr.bf16.mxu0 %v5620_v3  ;;  %v4441_v2 = vld [vmem:[%s6715_s3 + $0x14] ss:$8 sps:$4 sm:$0xff]  }
  0xf6   : > { %2746 = vmatprep.subr.bf16.mxu1 %v4312_v4  ;;  %v4351_v4 = vld [vmem:[%s6714_s2 + $0x224] ss:$8 sps:$4 sm:$0xff]  }
  0xf8   : > { %1339 = vmatpush1.bf16.msra.mxu0 %v5629_v5 }
  0xf9   : > { %2747 = vmatpush1.bf16.msra.mxu1 %v4310_v6  ;;  %1340 = vmatprep.subr.bf16.mxu0 %v5638_v7  ;;  %v5763_v6 = vcombine.low %v371_v58, %v375_v60  ;;  %v4355_v58 = vld [vmem:[%s6714_s2 + $0x240] ss:$8 sps:$4 sm:$0xff]   ;;  %v4447_v60 = vld [vmem:[%s6715_s3 + $0x44] ss:$8 sps:$4 sm:$0xff]  }
  0xfa   : > { %2748 = vmatprep.subr.bf16.mxu1 %v4318_v9  ;;  %v5766_v9 = vld [vmem:[%s5194_s17 + $0x10] sm:$0xff] }
  0xfc   : > { %1341 = vmatpush1.bf16.msra.mxu0 %v5647_v11 }
  0xfd   : > { %2749 = vmatpush1.bf16.msra.mxu1 %v4316_v13  ;;  %1342 = vmatprep.subr.bf16.mxu0 %v5656_v17  ;;  %v5769_v13 = vld [vmem:[%s5194_s17 + $0x30] sm:$0xff] }
  0xfe   : > { %2750 = vmatprep.subr.bf16.mxu1 %v4324_v18  ;;  %v4442_v18 = vld [vmem:[%s6715_s3 + $0x10] ss:$8 sps:$4 sm:$0xff]  }
 0x100   : > { %1343 = vmatpush1.bf16.msra.mxu0 %v5665_v21 }
 0x101   : > { %2751 = vmatpush1.bf16.msra.mxu1 %v4322_v24  ;;  %1344 = vmatprep.subr.bf16.mxu0 %v5674_v28  ;;  %v4349_v24 = vld [vmem:[%s6714_s2 + $0x220] ss:$8 sps:$4 sm:$0xff]  }
 0x102   : > { %2752 = vmatprep.subr.bf16.mxu1 %v4330_v15  ;;  %v4443_v15 = vld [vmem:[%s6715_s3 + $0x24] ss:$8 sps:$4 sm:$0xff]  }
 0x104   : > { %1345 = vmatpush1.bf16.msra.mxu0 %v5683_v20 }
 0x105   : > { %2753 = vmatpush1.bf16.msra.mxu1 %v4328_v30  ;;  %1346 = vmatprep.subr.bf16.mxu0 %v5692_v32  ;;  %v4354_v30 = vld [vmem:[%s6714_s2 + $0x234] ss:$8 sps:$4 sm:$0xff]  }
 0x106   : > { %2754 = vmatprep.subr.bf16.mxu1 %v4336_v37  ;;  %v5785_v37 = vcombine.high %v5766_v9, %v5769_v13 }
 0x108   : > { %1347 = vmatpush1.bf16.msra.mxu0 %v5701_v39 }
 0x109   : > { %2755 = vmatpush1.bf16.msra.mxu1 %v4334_v41  ;;  %1348 = vmatprep.subr.bf16.mxu0 %v5710_v44  ;;  %v4444_v41 = vld [vmem:[%s6715_s3 + $0x20] ss:$8 sps:$4 sm:$0xff]  }
 0x10a   : > { %2756 = vmatprep.subr.bf16.mxu1 %v4342_v46  ;;  %v4352_v46 = vld [vmem:[%s6714_s2 + $0x230] ss:$8 sps:$4 sm:$0xff]  }
 0x10c   : > { %1349 = vmatpush1.bf16.msra.mxu0 %v5719_v48 }
 0x10d   : > { %2757 = vmatpush1.bf16.msra.mxu1 %v4340_v50  ;;  %2885 = vmatprep.subr.bf16.mxu0 %v4439_v0  ;;  %v4445_v50 = vld [vmem:[%s6715_s3 + $0x34] ss:$8 sps:$4 sm:$0xff]   ;;  %v4448_v0 = vld [vmem:[%s6715_s3 + $0x40] ss:$8 sps:$4 sm:$0xff]  }
 0x10e   : > { %2779 = vmatprep.subr.bf16.mxu1 %v4345_v52  ;;  %v4357_v52 = vld [vmem:[%s6714_s2 + $0x244] ss:$8 sps:$4 sm:$0xff]  }
 0x10f   : > { %1351 = vmatmul.mubr.bf16.vlgmr.msra.gmra.mrb[0].mxu0 %v3481_v54  ;;  %v4446_v54 = vld [vmem:[%s6715_s3 + $0x30] ss:$8 sps:$4 sm:$0xff]  }
 0x110   : > { %2759 = vmatmul.mubr.bf16.vlgmr.msra.gmra.mrb[4].mxu1 %v5732_v56  ;;  %2886 = vmatpush1.bf16.msra.mxu0 %v4440_v33  ;;  %v4449_v33 = vld [vmem:[%s6715_s3 + $0x54] ss:$8 sps:$4 sm:$0xff]  }
 0x111   : > { %2780 = vmatpush1.bf16.msra.mxu1 %v4343_v62  ;;  %2887 = vmatprep.subr.bf16.mxu0 %v4441_v2  ;;  %v4360_v62 = vld [vmem:[%s6714_s2 + $0x254] ss:$8 sps:$4 sm:$0xff]   ;;  %v4450_v2 = vld [vmem:[%s6715_s3 + $0x50] ss:$8 sps:$4 sm:$0xff]  }
 0x112   : > { %2781 = vmatprep.subr.bf16.mxu1 %v4348_v23  ;;  %2768 = vmatprep.mubr.bf16.mxu1 %v5746_v26  ;;  %v4358_v23 = vld [vmem:[%s6714_s2 + $0x250] ss:$8 sps:$4 sm:$0xff]  }
 0x113   : > { %2917 = vmatprep.mubr.bf16.mxu0 %v5227_v22 }
 0x114   : > { %2888 = vmatpush1.bf16.msra.mxu0 %v4442_v18  ;;  %v4451_v18 = vld [vmem:[%s6715_s3 + $0x64] ss:$8 sps:$4 sm:$0xff]  }
 0x115   : > { %2782 = vmatpush1.bf16.msra.mxu1 %v4346_v35  ;;  %2889 = vmatprep.subr.bf16.mxu0 %v4443_v15  ;;  %v4363_v35 = vld [vmem:[%s6714_s2 + $0x264] ss:$8 sps:$4 sm:$0xff]   ;;  %v4452_v15 = vld [vmem:[%s6715_s3 + $0x60] ss:$8 sps:$4 sm:$0xff]  }
 0x116   : > { %2783 = vmatprep.subr.bf16.mxu1 %v4351_v4  ;;  %v4361_v4 = vld [vmem:[%s6714_s2 + $0x260] ss:$8 sps:$4 sm:$0xff]  }
 0x118   : > { %2769 = vmatmul.mubr.bf16.gmra.mrb[8].mxu1 %v5763_v6  ;;  %2890 = vmatpush1.bf16.msra.mxu0 %v4444_v41  ;;  %v4453_v41 = vld [vmem:[%s6715_s3 + $0x74] ss:$8 sps:$4 sm:$0xff]  }
 0x119   : > { %2784 = vmatpush1.bf16.msra.mxu1 %v4349_v24  ;;  %2891 = vmatprep.subr.bf16.mxu0 %v4445_v50  ;;  %v4366_v24 = vld [vmem:[%s6714_s2 + $0x274] ss:$8 sps:$4 sm:$0xff]   ;;  %v4454_v50 = vld [vmem:[%s6715_s3 + $0x70] ss:$8 sps:$4 sm:$0xff]  }
 0x11a   : > { %2785 = vmatprep.subr.bf16.mxu1 %v4354_v30  ;;  %2811 = vmatprep.mubr.bf16.mxu1 %v5785_v37  ;;  %v4364_v30 = vld [vmem:[%s6714_s2 + $0x270] ss:$8 sps:$4 sm:$0xff]  }
 0x11c   : > { %2892 = vmatpush1.bf16.msra.mxu0 %v4446_v54  ;;  %v4455_v54 = vld [vmem:[%s6715_s3 + $0x84] ss:$8 sps:$4 sm:$0xff]  }
 0x11d   : > { %2786 = vmatpush1.bf16.msra.mxu1 %v4352_v46  ;;  %2893 = vmatprep.subr.bf16.mxu0 %v4447_v60  ;;  %v4369_v46 = vld [vmem:[%s6714_s2 + $0x284] ss:$8 sps:$4 sm:$0xff]   ;;  %v4456_v60 = vld [vmem:[%s6715_s3 + $0x80] ss:$8 sps:$4 sm:$0xff]  }
 0x11e   : > { %2787 = vmatprep.subr.bf16.mxu1 %v4357_v52  ;;  %v4367_v52 = vld [vmem:[%s6714_s2 + $0x280] ss:$8 sps:$4 sm:$0xff]  }
 0x120   : > { %2894 = vmatpush1.bf16.msra.mxu0 %v4448_v0  ;;  %v4457_v0 = vld [vmem:[%s6715_s3 + $0x94] ss:$8 sps:$4 sm:$0xff]  }
 0x121   : > { %2788 = vmatpush1.bf16.msra.mxu1 %v4355_v58  ;;  %2895 = vmatprep.subr.bf16.mxu0 %v4449_v33  ;;  %v4372_v58 = vld [vmem:[%s6714_s2 + $0x294] ss:$8 sps:$4 sm:$0xff]   ;;  %v4458_v33 = vld [vmem:[%s6715_s3 + $0x90] ss:$8 sps:$4 sm:$0xff]  }
 0x122   : > { %2789 = vmatprep.subr.bf16.mxu1 %v4360_v62  ;;  %v4370_v62 = vld [vmem:[%s6714_s2 + $0x290] ss:$8 sps:$4 sm:$0xff]  }
 0x124   : > { %2896 = vmatpush1.bf16.msra.mxu0 %v4450_v2  ;;  %v4459_v2 = vld [vmem:[%s6715_s3 + $0xa4] ss:$8 sps:$4 sm:$0xff]  }
 0x125   : > { %2790 = vmatpush1.bf16.msra.mxu1 %v4358_v23  ;;  %2897 = vmatprep.subr.bf16.mxu0 %v4451_v18  ;;  %v4375_v23 = vld [vmem:[%s6714_s2 + $0x2a4] ss:$8 sps:$4 sm:$0xff]   ;;  %v4460_v18 = vld [vmem:[%s6715_s3 + $0xa0] ss:$8 sps:$4 sm:$0xff]  }
 0x126   : > { %2791 = vmatprep.subr.bf16.mxu1 %v4363_v35  ;;  %v4373_v35 = vld [vmem:[%s6714_s2 + $0x2a0] ss:$8 sps:$4 sm:$0xff]  }
 0x128   : > { %2898 = vmatpush1.bf16.msra.mxu0 %v4452_v15  ;;  %v4461_v15 = vld [vmem:[%s6715_s3 + $0xb4] ss:$8 sps:$4 sm:$0xff]  }
 0x129   : > { %2792 = vmatpush1.bf16.msra.mxu1 %v4361_v4  ;;  %2899 = vmatprep.subr.bf16.mxu0 %v4453_v41  ;;  %v4378_v4 = vld [vmem:[%s6714_s2 + $0x2b4] ss:$8 sps:$4 sm:$0xff]   ;;  %v4462_v41 = vld [vmem:[%s6715_s3 + $0xb0] ss:$8 sps:$4 sm:$0xff]  }
 0x12a   : > { %2793 = vmatprep.subr.bf16.mxu1 %v4366_v24  ;;  %v4376_v24 = vld [vmem:[%s6714_s2 + $0x2b0] ss:$8 sps:$4 sm:$0xff]  }
 0x12c   : > { %2900 = vmatpush1.bf16.msra.mxu0 %v4454_v50  ;;  %v4463_v50 = vld [vmem:[%s6715_s3 + $0xc4] ss:$8 sps:$4 sm:$0xff]  }
 0x12d   : > { %2794 = vmatpush1.bf16.msra.mxu1 %v4364_v30  ;;  %2901 = vmatprep.subr.bf16.mxu0 %v4455_v54  ;;  %v4381_v30 = vld [vmem:[%s6714_s2 + $0x2c4] ss:$8 sps:$4 sm:$0xff]   ;;  %v4464_v54 = vld [vmem:[%s6715_s3 + $0xc0] ss:$8 sps:$4 sm:$0xff]  }
 0x12e   : > { %2795 = vmatprep.subr.bf16.mxu1 %v4369_v46  ;;  %v4379_v46 = vld [vmem:[%s6714_s2 + $0x2c0] ss:$8 sps:$4 sm:$0xff]  }
 0x130   : > { %2902 = vmatpush1.bf16.msra.mxu0 %v4456_v60  ;;  %v4465_v60 = vld [vmem:[%s6715_s3 + $0xd4] ss:$8 sps:$4 sm:$0xff]  }
 0x131   : > { %2796 = vmatpush1.bf16.msra.mxu1 %v4367_v52  ;;  %2903 = vmatprep.subr.bf16.mxu0 %v4457_v0  ;;  %v4384_v52 = vld [vmem:[%s6714_s2 + $0x2d4] ss:$8 sps:$4 sm:$0xff]   ;;  %v4466_v0 = vld [vmem:[%s6715_s3 + $0xd0] ss:$8 sps:$4 sm:$0xff]  }
 0x132   : > { %2797 = vmatprep.subr.bf16.mxu1 %v4372_v58  ;;  %v4382_v58 = vld [vmem:[%s6714_s2 + $0x2d0] ss:$8 sps:$4 sm:$0xff]  }
 0x134   : > { %2904 = vmatpush1.bf16.msra.mxu0 %v4458_v33  ;;  %v4467_v33 = vld [vmem:[%s6715_s3 + $0xe4] ss:$8 sps:$4 sm:$0xff]  }
 0x135   : > { %2798 = vmatpush1.bf16.msra.mxu1 %v4370_v62  ;;  %2905 = vmatprep.subr.bf16.mxu0 %v4459_v2  ;;  %v4387_v62 = vld [vmem:[%s6714_s2 + $0x2e4] ss:$8 sps:$4 sm:$0xff]   ;;  %v4468_v2 = vld [vmem:[%s6715_s3 + $0xe0] ss:$8 sps:$4 sm:$0xff]  }
 0x136   : > { %2799 = vmatprep.subr.bf16.mxu1 %v4375_v23  ;;  %v4385_v23 = vld [vmem:[%s6714_s2 + $0x2e0] ss:$8 sps:$4 sm:$0xff]  }
 0x138   : > { %2906 = vmatpush1.bf16.msra.mxu0 %v4460_v18  ;;  %v4469_v18 = vld [vmem:[%s6715_s3 + $0xf4] ss:$8 sps:$4 sm:$0xff]  }
 0x139   : > { %2800 = vmatpush1.bf16.msra.mxu1 %v4373_v35  ;;  %2907 = vmatprep.subr.bf16.mxu0 %v4461_v15  ;;  %v4390_v35 = vld [vmem:[%s6714_s2 + $0x2f4] ss:$8 sps:$4 sm:$0xff]   ;;  %v5947_v15 = vcombine.low %v5766_v9, %v5769_v13 }
 0x13a   : > { %2801 = vmatprep.subr.bf16.mxu1 %v4378_v4  ;;  %v4388_v4 = vld [vmem:[%s6714_s2 + $0x2f0] ss:$8 sps:$4 sm:$0xff]   ;;  %v4396_v9 = vld [vmem:[%s6714_s2 + $0x314] ss:$8 sps:$4 sm:$0xff]  }
 0x13c   : > { %2908 = vmatpush1.bf16.msra.mxu0 %v4462_v41  ;;  %v376_v41 = vld [vmem:[%s5194_s17 + $0x70] sm:$0xff] }
 0x13d   : > { %2802 = vmatpush1.bf16.msra.mxu1 %v4376_v24  ;;  %2909 = vmatprep.subr.bf16.mxu0 %v4463_v50  ;;  %v4393_v24 = vld [vmem:[%s6714_s2 + $0x304] ss:$8 sps:$4 sm:$0xff]   ;;  %v4391_v50 = vld [vmem:[%s6714_s2 + $0x300] ss:$8 sps:$4 sm:$0xff]  }
 0x13e   : > { %2803 = vmatprep.subr.bf16.mxu1 %v4381_v30  ;;  %v372_v30 = vld [vmem:[%s5194_s17 + $0x50] sm:$0xff] }
 0x13f   : > { %v5963_v13 = vcombine.high %v372_v30, %v376_v41 }
 0x140   : > { %2910 = vmatpush1.bf16.msra.mxu0 %v4464_v54  ;;  %v4472_v54 = vld [vmem:[%s6715_s3 + $0x100] ss:$8 sps:$4 sm:$0xff]  }
 0x141   : > { %2804 = vmatpush1.bf16.msra.mxu1 %v4379_v46  ;;  %2911 = vmatprep.subr.bf16.mxu0 %v4465_v60  ;;  %v4470_v46 = vld [vmem:[%s6715_s3 + $0xf0] ss:$8 sps:$4 sm:$0xff]   ;;  %v4473_v60 = vld [vmem:[%s6715_s3 + $0x114] ss:$8 sps:$4 sm:$0xff]  }
 0x142   : > { %2805 = vmatprep.subr.bf16.mxu1 %v4384_v52  ;;  %v4471_v52 = vld [vmem:[%s6715_s3 + $0x104] ss:$8 sps:$4 sm:$0xff]  }
 0x144   : > { %2912 = vmatpush1.bf16.msra.mxu0 %v4466_v0  ;;  %v5981_v0 = vcombine.low %v372_v30, %v376_v41  ;;  %v4476_v30 = vld [vmem:[%s6715_s3 + $0x120] ss:$8 sps:$4 sm:$0xff]   ;;  %v4400_v41 = vld [vmem:[%s6714_s2 + $0x330] ss:$8 sps:$4 sm:$0xff]  }
 0x145   : > { %2806 = vmatpush1.bf16.msra.mxu1 %v4382_v58  ;;  %2913 = vmatprep.subr.bf16.mxu0 %v4467_v33  ;;  %v4394_v58 = vld [vmem:[%s6714_s2 + $0x310] ss:$8 sps:$4 sm:$0xff]  }
 0x146   : > { %2807 = vmatprep.subr.bf16.mxu1 %v4387_v62  ;;  %v4399_v62 = vld [vmem:[%s6714_s2 + $0x324] ss:$8 sps:$4 sm:$0xff]   ;;  %v5987_v33 = vld [vmem:[%s5194_s17 + $0x38] sm:$0xff] }
 0x148   : > { %2914 = vmatpush1.bf16.msra.mxu0 %v4468_v2  ;;  %v4397_v2 = vld [vmem:[%s6714_s2 + $0x320] ss:$8 sps:$4 sm:$0xff]  }
 0x149   : > { %2808 = vmatpush1.bf16.msra.mxu1 %v4385_v23  ;;  %2915 = vmatprep.subr.bf16.mxu0 %v4469_v18  ;;  %v5984_v23 = vld [vmem:[%s5194_s17 + $0x18] sm:$0xff] }
 0x14a   : > { %2809 = vmatprep.subr.bf16.mxu1 %v4390_v35  ;;  %v4474_v35 = vld [vmem:[%s6715_s3 + $0x110] ss:$8 sps:$4 sm:$0xff]   ;;  %v4402_v18 = vld [vmem:[%s6714_s2 + $0x334] ss:$8 sps:$4 sm:$0xff]  }
 0x14c   : > { %2916 = vmatpush1.bf16.msra.mxu0 %v4470_v46  ;;  %v4477_v46 = vld [vmem:[%s6715_s3 + $0x134] ss:$8 sps:$4 sm:$0xff]  }
 0x14d   : > { %2810 = vmatpush1.bf16.msra.mxu1 %v4388_v4  ;;  %2938 = vmatprep.subr.bf16.mxu0 %v4471_v52  ;;  %v4475_v4 = vld [vmem:[%s6715_s3 + $0x124] ss:$8 sps:$4 sm:$0xff]   ;;  %v4478_v52 = vld [vmem:[%s6715_s3 + $0x130] ss:$8 sps:$4 sm:$0xff]  }
 0x14e   : > { %2832 = vmatprep.subr.bf16.mxu1 %v4393_v24  ;;  %v6003_v24 = vcombine.high %v5984_v23, %v5987_v33 }
 0x14f   : > { %2918 = vmatmul.mubr.bf16.vlgmr.msra.gmra.mrb[4].mxu0 %v5420_v25 }
 0x150   : > { %2812 = vmatmul.mubr.bf16.vlgmr.msra.gmra.mrb[4].mxu1 %v5947_v15  ;;  %2939 = vmatpush1.bf16.msra.mxu0 %v4472_v54  ;;  %v4479_v54 = vld [vmem:[%s6715_s3 + $0x144] ss:$8 sps:$4 sm:$0xff]  }
 0x151   : > { %2833 = vmatpush1.bf16.msra.mxu1 %v4391_v50  ;;  %2940 = vmatprep.subr.bf16.mxu0 %v4473_v60  ;;  %v4405_v50 = vld [vmem:[%s6714_s2 + $0x344] ss:$8 sps:$4 sm:$0xff]   ;;  %v4480_v60 = vld [vmem:[%s6715_s3 + $0x140] ss:$8 sps:$4 sm:$0xff]  }
 0x152   : > { %2834 = vmatprep.subr.bf16.mxu1 %v4396_v9  ;;  %2821 = vmatprep.mubr.bf16.mxu1 %v5963_v13  ;;  %v4403_v9 = vld [vmem:[%s6714_s2 + $0x340] ss:$8 sps:$4 sm:$0xff]  }
 0x153   : > { %2927 = vmatprep.mubr.bf16.mxu0 %v5443_v19 }
 0x154   : > { %2941 = vmatpush1.bf16.msra.mxu0 %v4474_v35  ;;  %v4481_v35 = vld [vmem:[%s6715_s3 + $0x154] ss:$8 sps:$4 sm:$0xff]  }
 0x155   : > { %2835 = vmatpush1.bf16.msra.mxu1 %v4394_v58  ;;  %2942 = vmatprep.subr.bf16.mxu0 %v4475_v4  ;;  %v4408_v58 = vld [vmem:[%s6714_s2 + $0x354] ss:$8 sps:$4 sm:$0xff]  }
 0x156   : > { %2836 = vmatprep.subr.bf16.mxu1 %v4399_v62  ;;  %v4406_v62 = vld [vmem:[%s6714_s2 + $0x350] ss:$8 sps:$4 sm:$0xff]  }
 0x157   : > { %2928 = vmatmul.mubr.bf16.gmra.mrb[8].mxu0 %v5470_v34 }
 0x158   : > { %2822 = vmatmul.mubr.bf16.gmra.mrb[8].mxu1 %v5981_v0  ;;  %2943 = vmatpush1.bf16.msra.mxu0 %v4476_v30 }
 0x159   : > { %2837 = vmatpush1.bf16.msra.mxu1 %v4397_v2  ;;  %2944 = vmatprep.subr.bf16.mxu0 %v4477_v46  ;;  %v4411_v2 = vld [vmem:[%s6714_s2 + $0x364] ss:$8 sps:$4 sm:$0xff]   ;;  %v4409_v46 = vld [vmem:[%s6714_s2 + $0x360] ss:$8 sps:$4 sm:$0xff]  }
 0x15a   : > { %2838 = vmatprep.subr.bf16.mxu1 %v4402_v18  ;;  %2864 = vmatprep.mubr.bf16.mxu1 %v6003_v24 }
 0x15b   : > { %2970 = vmatprep.mubr.bf16.mxu0 %v5503_v42 }
 0x15c   : > { %2945 = vmatpush1.bf16.msra.mxu0 %v4478_v52  ;;  %v4483_v52 = vld [vmem:[%s6715_s3 + $0x164] ss:$8 sps:$4 sm:$0xff]  }
 0x15d   : > { %2839 = vmatpush1.bf16.msra.mxu1 %v4400_v41  ;;  %2946 = vmatprep.subr.bf16.mxu0 %v4479_v54  ;;  %v4482_v41 = vld [vmem:[%s6715_s3 + $0x150] ss:$8 sps:$4 sm:$0xff]   ;;  %v4484_v54 = vld [vmem:[%s6715_s3 + $0x160] ss:$8 sps:$4 sm:$0xff]  }
 0x15e   : > { %2840 = vmatprep.subr.bf16.mxu1 %v4405_v50 }
 0x160   : > { %2947 = vmatpush1.bf16.msra.mxu0 %v4480_v60  ;;  %v4485_v60 = vld [vmem:[%s6715_s3 + $0x174] ss:$8 sps:$4 sm:$0xff]  }
 0x161   : > { %2841 = vmatpush1.bf16.msra.mxu1 %v4403_v9  ;;  %2948 = vmatprep.subr.bf16.mxu0 %v4481_v35  ;;  %v4414_v9 = vld [vmem:[%s6714_s2 + $0x374] ss:$8 sps:$4 sm:$0xff]   ;;  %v4486_v35 = vld [vmem:[%s6715_s3 + $0x170] ss:$8 sps:$4 sm:$0xff]  }
 0x162   : > { %2842 = vmatprep.subr.bf16.mxu1 %v4408_v58  ;;  %v4412_v58 = vld [vmem:[%s6714_s2 + $0x370] ss:$8 sps:$4 sm:$0xff]  }
 0x163   : > { %v6045_v4 = vpop.f32.mrb[0].mxu1 }
 0x164   : > { %v6047_v18 = vpop.f32.mrb[1].mxu1  ;;  %2949 = vmatpush1.bf16.msra.mxu0 %v4482_v41  ;;  %v4420_v41 = vld [vmem:[%s6714_s2 + $0x394] ss:$8 sps:$4 sm:$0xff]  }
 0x165   : > { %v1822_v30 = vpop.f32.mrb[2].mxu1  ;;  %2843 = vmatpush1.bf16.msra.mxu1 %v4406_v62  ;;  %2950 = vmatprep.subr.bf16.mxu0 %v4483_v52  ;;  %v4417_v62 = vld [vmem:[%s6714_s2 + $0x384] ss:$8 sps:$4 sm:$0xff]   ;;  %v4489_v52 = vld [vmem:[%s6715_s3 + $0x194] ss:$8 sps:$4 sm:$0xff]  }
 0x166   : > { %v1823_v50 = vpop.f32.mrb[3].mxu1  ;;  %2844 = vmatprep.subr.bf16.mxu1 %v4411_v2  ;;  %v4415_v2 = vld [vmem:[%s6714_s2 + $0x380] ss:$8 sps:$4 sm:$0xff]   ;;  %v4487_v30 = vld [vmem:[%s6715_s3 + $0x184] ss:$8 sps:$4 sm:$0xff]  }
 0x167   : > { %v4418_v50 = vld [vmem:[%s6714_s2 + $0x390] ss:$8 sps:$4 sm:$0xff]  }
 0x168   : > { %2951 = vmatpush1.bf16.msra.mxu0 %v4484_v54  ;;  %v4490_v54 = vld [vmem:[%s6715_s3 + $0x190] ss:$8 sps:$4 sm:$0xff]  }
 0x169   : > { %2845 = vmatpush1.bf16.msra.mxu1 %v4409_v46  ;;  %2952 = vmatprep.subr.bf16.mxu0 %v4485_v60  ;;  %v4488_v46 = vld [vmem:[%s6715_s3 + $0x180] ss:$8 sps:$4 sm:$0xff]   ;;  %v4491_v60 = vld [vmem:[%s6715_s3 + $0x1a4] ss:$8 sps:$4 sm:$0xff]  }
 0x16a   : > { %2846 = vmatprep.subr.bf16.mxu1 %v4414_v9  ;;  %v4423_v9 = vld [vmem:[%s6714_s2 + $0x3a4] ss:$8 sps:$4 sm:$0xff]  }
 0x16c   : > { %2953 = vmatpush1.bf16.msra.mxu0 %v4486_v35  ;;  %v4492_v35 = vld [vmem:[%s6715_s3 + $0x1a0] ss:$8 sps:$4 sm:$0xff]  }
 0x16d   : > { %2847 = vmatpush1.bf16.msra.mxu1 %v4412_v58  ;;  %2954 = vmatprep.subr.bf16.mxu0 %v4487_v30  ;;  %v4421_v58 = vld [vmem:[%s6714_s2 + $0x3a0] ss:$8 sps:$4 sm:$0xff]   ;;  %v4493_v30 = vld [vmem:[%s6715_s3 + $0x1b4] ss:$8 sps:$4 sm:$0xff]  }
 0x16e   : > { %2848 = vmatprep.subr.bf16.mxu1 %v4417_v62  ;;  %v4426_v62 = vld [vmem:[%s6714_s2 + $0x3b4] ss:$8 sps:$4 sm:$0xff]  }
 0x170   : > { %2955 = vmatpush1.bf16.msra.mxu0 %v4488_v46  ;;  %v4494_v46 = vld [vmem:[%s6715_s3 + $0x1b0] ss:$8 sps:$4 sm:$0xff]  }
 0x171   : > { %2849 = vmatpush1.bf16.msra.mxu1 %v4415_v2  ;;  %2956 = vmatprep.subr.bf16.mxu0 %v4489_v52  ;;  %v4424_v2 = vld [vmem:[%s6714_s2 + $0x3b0] ss:$8 sps:$4 sm:$0xff]   ;;  %v4495_v52 = vld [vmem:[%s6715_s3 + $0x1c4] ss:$8 sps:$4 sm:$0xff]  }
 0x172   : > { %2850 = vmatprep.subr.bf16.mxu1 %v4420_v41  ;;  %v4429_v41 = vld [vmem:[%s6714_s2 + $0x3c4] ss:$8 sps:$4 sm:$0xff]  }
 0x174   : > { %2957 = vmatpush1.bf16.msra.mxu0 %v4490_v54  ;;  %v4496_v54 = vld [vmem:[%s6715_s3 + $0x1c0] ss:$8 sps:$4 sm:$0xff]  }
 0x175   : > { %2851 = vmatpush1.bf16.msra.mxu1 %v4418_v50  ;;  %2958 = vmatprep.subr.bf16.mxu0 %v4491_v60  ;;  %v4427_v50 = vld [vmem:[%s6714_s2 + $0x3c0] ss:$8 sps:$4 sm:$0xff]   ;;  %v4497_v60 = vld [vmem:[%s6715_s3 + $0x1d4] ss:$8 sps:$4 sm:$0xff]  }
 0x176   : > { %2852 = vmatprep.subr.bf16.mxu1 %v4423_v9  ;;  %v4432_v9 = vld [vmem:[%s6714_s2 + $0x3d4] ss:$8 sps:$4 sm:$0xff]  }
 0x178   : > { %2959 = vmatpush1.bf16.msra.mxu0 %v4492_v35  ;;  %v4498_v35 = vld [vmem:[%s6715_s3 + $0x1d0] ss:$8 sps:$4 sm:$0xff]  }
 0x179   : > { %2853 = vmatpush1.bf16.msra.mxu1 %v4421_v58  ;;  %2960 = vmatprep.subr.bf16.mxu0 %v4493_v30  ;;  %v4430_v58 = vld [vmem:[%s6714_s2 + $0x3d0] ss:$8 sps:$4 sm:$0xff]   ;;  %v4499_v30 = vld [vmem:[%s6715_s3 + $0x1e4] ss:$8 sps:$4 sm:$0xff]  }
 0x17a   : > { %2854 = vmatprep.subr.bf16.mxu1 %v4426_v62  ;;  %v4435_v62 = vld [vmem:[%s6714_s2 + $0x3e4] ss:$8 sps:$4 sm:$0xff]  }
 0x17c   : > { %2961 = vmatpush1.bf16.msra.mxu0 %v4494_v46  ;;  %v4500_v46 = vld [vmem:[%s6715_s3 + $0x1e0] ss:$8 sps:$4 sm:$0xff]  }
 0x17d   : > { %2855 = vmatpush1.bf16.msra.mxu1 %v4424_v2  ;;  %2962 = vmatprep.subr.bf16.mxu0 %v4495_v52  ;;  %v4433_v2 = vld [vmem:[%s6714_s2 + $0x3e0] ss:$8 sps:$4 sm:$0xff]   ;;  %v4501_v52 = vld [vmem:[%s6715_s3 + $0x1f4] ss:$8 sps:$4 sm:$0xff]  }
 0x17e   : > { %2856 = vmatprep.subr.bf16.mxu1 %v4429_v41  ;;  %v4438_v41 = vld [vmem:[%s6714_s2 + $0x3f4] ss:$8 sps:$4 sm:$0xff]  }
 0x180   : > { %2963 = vmatpush1.bf16.msra.mxu0 %v4496_v54  ;;  %v373_v54 = vld [vmem:[%s5194_s17 + $0x58] sm:$0xff] }
 0x181   : > { %2857 = vmatpush1.bf16.msra.mxu1 %v4427_v50  ;;  %2964 = vmatprep.subr.bf16.mxu0 %v4497_v60  ;;  %v4436_v50 = vld [vmem:[%s6714_s2 + $0x3f0] ss:$8 sps:$4 sm:$0xff]  }
 0x182   : > { %2858 = vmatprep.subr.bf16.mxu1 %v4432_v9  ;;  %v6168_v9 = vcombine.low %v5984_v23, %v5987_v33  ;;  %v4502_v60 = vld [vmem:[%s6715_s3 + $0x1f0] ss:$8 sps:$4 sm:$0xff]   ;;  %v4505_v33 = vld [vmem:[%s6715_s3 + $0x200] ss:$8 sps:$4 sm:$0xff]  }
 0x184   : > { %2965 = vmatpush1.bf16.msra.mxu0 %v4498_v35  ;;  %v4504_v35 = vld [vmem:[%s6716_s4 + $0x4] ss:$8 sps:$4 sm:$0xff]  }
 0x185   : > { %2859 = vmatpush1.bf16.msra.mxu1 %v4430_v58  ;;  %2966 = vmatprep.subr.bf16.mxu0 %v4499_v30  ;;  %v377_v58 = vld [vmem:[%s5194_s17 + $0x78] sm:$0xff] }
 0x186   : > { %2860 = vmatprep.subr.bf16.mxu1 %v4435_v62  ;;  %v4503_v62 = vld [vmem:[%s6715_s3 + $0x204] ss:$8 sps:$4 sm:$0xff]   ;;  %v6181_v23 = vcombine.high %v373_v54, %v377_v58  ;;  %v4507_v30 = vld [vmem:[%s6715_s3 + $0x214] ss:$8 sps:$4 sm:$0xff]  }
 0x188   : > { %2967 = vmatpush1.bf16.msra.mxu0 %v4500_v46  ;;  %v6199_v46 = vcombine.low %v373_v54, %v377_v58  ;;  %v4512_v54 = vld [vmem:[%s6716_s4 + $0x24] ss:$8 sps:$4 sm:$0xff]   ;;  %v4513_v58 = vld [vmem:[%s6715_s3 + $0x220] ss:$8 sps:$4 sm:$0xff]  }
 0x189   : > { %2861 = vmatpush1.bf16.msra.mxu1 %v4433_v2  ;;  %2968 = vmatprep.subr.bf16.mxu0 %v4501_v52  ;;  %v4506_v2 = vld [vmem:[%s6716_s4] ss:$8 sps:$4 sm:$0xff]   ;;  %v4510_v52 = vld [vmem:[%s6716_s4 + $0x10] ss:$8 sps:$4 sm:$0xff]  }
 0x18a   : > { %2862 = vmatprep.subr.bf16.mxu1 %v4438_v41  ;;  %v4508_v41 = vld [vmem:[%s6716_s4 + $0x14] ss:$8 sps:$4 sm:$0xff]  }
 0x18c   : > { %2969 = vmatpush1.bf16.msra.mxu0 %v4502_v60  ;;  %v4511_v60 = vld [vmem:[%s6715_s3 + $0x224] ss:$8 sps:$4 sm:$0xff]  }
 0x18d   : > { %2863 = vmatpush1.bf16.msra.mxu1 %v4436_v50  ;;  %2991 = vmatprep.subr.bf16.mxu0 %v4503_v62  ;;  %v4509_v50 = vld [vmem:[%s6715_s3 + $0x210] ss:$8 sps:$4 sm:$0xff]   ;;  %v4514_v62 = vld [vmem:[%s6716_s4 + $0x20] ss:$8 sps:$4 sm:$0xff]  }
 0x18e   : > { %3097 = vmatprep.subr.bf16.mxu1 %v4504_v35  ;;  %v4515_v35 = vld [vmem:[%s6715_s3 + $0x234] ss:$8 sps:$4 sm:$0xff]  }
 0x18f   : > { %2971 = vmatmul.mubr.bf16.vlgmr.msra.gmra.mrb[4].mxu0 %v5732_v56 }
 0x190   : > { %2865 = vmatmul.mubr.bf16.vlgmr.msra.gmra.mrb[4].mxu1 %v6168_v9  ;;  %2992 = vmatpush1.bf16.msra.mxu0 %v4505_v33  ;;  %v4516_v33 = vld [vmem:[%s6716_s4 + $0x34] ss:$8 sps:$4 sm:$0xff]  }
 0x191   : > { %3098 = vmatpush1.bf16.msra.mxu1 %v4506_v2  ;;  %2993 = vmatprep.subr.bf16.mxu0 %v4507_v30  ;;  %v4517_v2 = vld [vmem:[%s6715_s3 + $0x230] ss:$8 sps:$4 sm:$0xff]  }
 0x192   : > { %3099 = vmatprep.subr.bf16.mxu1 %v4508_v41  ;;  %2874 = vmatprep.mubr.bf16.mxu1 %v6181_v23  ;;  %v4518_v30 = vld [vmem:[%s6716_s4 + $0x30] ss:$8 sps:$4 sm:$0xff]   ;;  %v4519_v41 = vld [vmem:[%s6715_s3 + $0x244] ss:$8 sps:$4 sm:$0xff]  }
 0x193   : > { %2980 = vmatprep.mubr.bf16.mxu0 %v5746_v26 }
 0x194   : > { %2994 = vmatpush1.bf16.msra.mxu0 %v4509_v50  ;;  %v4522_v50 = vld [vmem:[%s6716_s4 + $0x40] ss:$8 sps:$4 sm:$0xff]  }
 0x195   : > { %3100 = vmatpush1.bf16.msra.mxu1 %v4510_v52  ;;  %2995 = vmatprep.subr.bf16.mxu0 %v4511_v60  ;;  %v4523_v52 = vld [vmem:[%s6715_s3 + $0x254] ss:$8 sps:$4 sm:$0xff]  }
 0x196   : > { %3101 = vmatprep.subr.bf16.mxu1 %v4512_v54  ;;  %v4524_v60 = vld [vmem:[%s6716_s4 + $0x54] ss:$8 sps:$4 sm:$0xff]   ;;  %v4525_v54 = vld [vmem:[%s6715_s3 + $0x250] ss:$8 sps:$4 sm:$0xff]  }
 0x197   : > { %2981 = vmatmul.mubr.bf16.gmra.mrb[8].mxu0 %v5763_v6 }
 0x198   : > { %2875 = vmatmul.mubr.bf16.gmra.mrb[8].mxu1 %v6199_v46  ;;  %2996 = vmatpush1.bf16.msra.mxu0 %v4513_v58  ;;  %v4526_v58 = vld [vmem:[%s6716_s4 + $0x50] ss:$8 sps:$4 sm:$0xff]  }
 0x199   : > { %3102 = vmatpush1.bf16.msra.mxu1 %v4514_v62  ;;  %2997 = vmatprep.subr.bf16.mxu0 %v4515_v35  ;;  %v4527_v62 = vld [vmem:[%s6715_s3 + $0x264] ss:$8 sps:$4 sm:$0xff]  }
 0x19a   : > { %3103 = vmatprep.subr.bf16.mxu1 %v4516_v33  ;;  %3023 = vmatprep.mubr.bf16.mxu0 %v5785_v37  ;;  %v4520_v37 = vld [vmem:[%s6716_s4 + $0x44] ss:$8 sps:$4 sm:$0xff]   ;;  %v4529_v33 = vld [vmem:[%s6715_s3 + $0x260] ss:$8 sps:$4 sm:$0xff]  }
 0x19b   : > { %3129 = vmatprep.mubr.bf16.mxu1 %v5227_v22  ;;  %v4521_v22 = vld [vmem:[%s6715_s3 + $0x240] ss:$8 sps:$4 sm:$0xff]   ;;  %v4528_v35 = vld [vmem:[%s6716_s4 + $0x64] ss:$8 sps:$4 sm:$0xff]  }
 0x19c   : > { %2998 = vmatpush1.bf16.msra.mxu0 %v4517_v2  ;;  %v4530_v2 = vld [vmem:[%s6716_s4 + $0x60] ss:$8 sps:$4 sm:$0xff]  }
 0x19d   : > { %3104 = vmatpush1.bf16.msra.mxu1 %v4518_v30  ;;  %2999 = vmatprep.subr.bf16.mxu0 %v4519_v41  ;;  %v4531_v30 = vld [vmem:[%s6715_s3 + $0x274] ss:$8 sps:$4 sm:$0xff]  }
 0x19e   : > { %3105 = vmatprep.subr.bf16.mxu1 %v4520_v37  ;;  %v4532_v41 = vld [vmem:[%s6716_s4 + $0x74] ss:$8 sps:$4 sm:$0xff]   ;;  %v4533_v37 = vld [vmem:[%s6715_s3 + $0x270] ss:$8 sps:$4 sm:$0xff]  }
 0x1a0   : > { %3000 = vmatpush1.bf16.msra.mxu0 %v4521_v22  ;;  %v4534_v22 = vld [vmem:[%s6716_s4 + $0x70] ss:$8 sps:$4 sm:$0xff]  }
 0x1a1   : > { %3106 = vmatpush1.bf16.msra.mxu1 %v4522_v50  ;;  %3001 = vmatprep.subr.bf16.mxu0 %v4523_v52  ;;  %v4535_v50 = vld [vmem:[%s6715_s3 + $0x284] ss:$8 sps:$4 sm:$0xff]  }
 0x1a2   : > { %3107 = vmatprep.subr.bf16.mxu1 %v4524_v60  ;;  %v4536_v52 = vld [vmem:[%s6716_s4 + $0x84] ss:$8 sps:$4 sm:$0xff]   ;;  %v4537_v60 = vld [vmem:[%s6715_s3 + $0x280] ss:$8 sps:$4 sm:$0xff]  }
 0x1a4   : > { %3002 = vmatpush1.bf16.msra.mxu0 %v4525_v54  ;;  %v4538_v54 = vld [vmem:[%s6716_s4 + $0x80] ss:$8 sps:$4 sm:$0xff]  }
 0x1a5   : > { %3108 = vmatpush1.bf16.msra.mxu1 %v4526_v58  ;;  %3003 = vmatprep.subr.bf16.mxu0 %v4527_v62  ;;  %v4539_v58 = vld [vmem:[%s6715_s3 + $0x294] ss:$8 sps:$4 sm:$0xff]  }
 0x1a6   : > { %3109 = vmatprep.subr.bf16.mxu1 %v4528_v35  ;;  %v4540_v62 = vld [vmem:[%s6716_s4 + $0x94] ss:$8 sps:$4 sm:$0xff]   ;;  %v4541_v35 = vld [vmem:[%s6715_s3 + $0x290] ss:$8 sps:$4 sm:$0xff]  }
 0x1a8   : > { %3004 = vmatpush1.bf16.msra.mxu0 %v4529_v33  ;;  %v4542_v33 = vld [vmem:[%s6716_s4 + $0x90] ss:$8 sps:$4 sm:$0xff]  }
 0x1a9   : > { %3110 = vmatpush1.bf16.msra.mxu1 %v4530_v2  ;;  %3005 = vmatprep.subr.bf16.mxu0 %v4531_v30  ;;  %v4543_v2 = vld [vmem:[%s6715_s3 + $0x2a4] ss:$8 sps:$4 sm:$0xff]  }
 0x1aa   : > { %3111 = vmatprep.subr.bf16.mxu1 %v4532_v41  ;;  %v4544_v30 = vld [vmem:[%s6716_s4 + $0xa4] ss:$8 sps:$4 sm:$0xff]   ;;  %v4545_v41 = vld [vmem:[%s6715_s3 + $0x2a0] ss:$8 sps:$4 sm:$0xff]  }
 0x1ac   : > { %3006 = vmatpush1.bf16.msra.mxu0 %v4533_v37  ;;  %v4546_v37 = vld [vmem:[%s6716_s4 + $0xa0] ss:$8 sps:$4 sm:$0xff]  }
 0x1ad   : > { %3112 = vmatpush1.bf16.msra.mxu1 %v4534_v22  ;;  %3007 = vmatprep.subr.bf16.mxu0 %v4535_v50  ;;  %v4547_v22 = vld [vmem:[%s6715_s3 + $0x2b4] ss:$8 sps:$4 sm:$0xff]  }
 0x1ae   : > { %3113 = vmatprep.subr.bf16.mxu1 %v4536_v52  ;;  %v4548_v50 = vld [vmem:[%s6716_s4 + $0xb4] ss:$8 sps:$4 sm:$0xff]   ;;  %v4549_v52 = vld [vmem:[%s6715_s3 + $0x2b0] ss:$8 sps:$4 sm:$0xff]  }
 0x1b0   : > { %3008 = vmatpush1.bf16.msra.mxu0 %v4537_v60  ;;  %v4550_v60 = vld [vmem:[%s6716_s4 + $0xb0] ss:$8 sps:$4 sm:$0xff]  }
 0x1b1   : > { %3114 = vmatpush1.bf16.msra.mxu1 %v4538_v54  ;;  %3009 = vmatprep.subr.bf16.mxu0 %v4539_v58  ;;  %v4551_v54 = vld [vmem:[%s6715_s3 + $0x2c4] ss:$8 sps:$4 sm:$0xff]  }
 0x1b2   : > { %3115 = vmatprep.subr.bf16.mxu1 %v4540_v62  ;;  %v4552_v58 = vld [vmem:[%s6716_s4 + $0xc4] ss:$8 sps:$4 sm:$0xff]   ;;  %v4553_v62 = vld [vmem:[%s6715_s3 + $0x2c0] ss:$8 sps:$4 sm:$0xff]  }
 0x1b4   : > { %3010 = vmatpush1.bf16.msra.mxu0 %v4541_v35  ;;  %v4554_v35 = vld [vmem:[%s6716_s4 + $0xc0] ss:$8 sps:$4 sm:$0xff]  }
 0x1b5   : > { %3116 = vmatpush1.bf16.msra.mxu1 %v4542_v33  ;;  %3011 = vmatprep.subr.bf16.mxu0 %v4543_v2  ;;  %v4555_v33 = vld [vmem:[%s6715_s3 + $0x2d4] ss:$8 sps:$4 sm:$0xff]  }
 0x1b6   : > { %3117 = vmatprep.subr.bf16.mxu1 %v4544_v30  ;;  %v4556_v2 = vld [vmem:[%s6716_s4 + $0xd4] ss:$8 sps:$4 sm:$0xff]   ;;  %v4557_v30 = vld [vmem:[%s6715_s3 + $0x2d0] ss:$8 sps:$4 sm:$0xff]  }
 0x1b8   : > { %3012 = vmatpush1.bf16.msra.mxu0 %v4545_v41  ;;  %v4558_v41 = vld [vmem:[%s6716_s4 + $0xd0] ss:$8 sps:$4 sm:$0xff]  }
 0x1b9   : > { %3118 = vmatpush1.bf16.msra.mxu1 %v4546_v37  ;;  %3013 = vmatprep.subr.bf16.mxu0 %v4547_v22  ;;  %v4559_v37 = vld [vmem:[%s6715_s3 + $0x2e4] ss:$8 sps:$4 sm:$0xff]  }
 0x1ba   : > { %3119 = vmatprep.subr.bf16.mxu1 %v4548_v50  ;;  %v4560_v22 = vld [vmem:[%s6716_s4 + $0xe4] ss:$8 sps:$4 sm:$0xff]   ;;  %v4561_v50 = vld [vmem:[%s6716_s4 + $0xe0] ss:$8 sps:$4 sm:$0xff]  }
 0x1bc   : > { %3014 = vmatpush1.bf16.msra.mxu0 %v4549_v52  ;;  %v4562_v52 = vld [vmem:[%s6716_s4 + $0xf4] ss:$8 sps:$4 sm:$0xff]  }
 0x1bd   : > { %3120 = vmatpush1.bf16.msra.mxu1 %v4550_v60  ;;  %3015 = vmatprep.subr.bf16.mxu0 %v4551_v54  ;;  %v4563_v60 = vld [vmem:[%s6716_s4 + $0xf0] ss:$8 sps:$4 sm:$0xff]  }
 0x1be   : > { %3121 = vmatprep.subr.bf16.mxu1 %v4552_v58 }
 0x1c0   : > { %3016 = vmatpush1.bf16.msra.mxu0 %v4553_v62 }
 0x1c1   : > { %3122 = vmatpush1.bf16.msra.mxu1 %v4554_v35  ;;  %3017 = vmatprep.subr.bf16.mxu0 %v4555_v33  ;;  %v3211_v35 = vlaneseq }
 0x1c2   : > { %3123 = vmatprep.subr.bf16.mxu1 %v4556_v2 }
 0x1c3   : > { %v6543_v33 = vshrl.u32 %v3211_v35, 7 }
 0x1c4   : > { %3018 = vmatpush1.bf16.msra.mxu0 %v4557_v30 }
 0x1c5   : > { %3124 = vmatpush1.bf16.msra.mxu1 %v4558_v41  ;;  %3019 = vmatprep.subr.bf16.mxu0 %v4559_v37  ;;  %v386_v41 = vld [vmem:[%s6717_s5] sm:$0x3]  ;;  %vm3213_vm0 = vcmp.lt.s32.totalorder %v6543_v33, 7  ;;  %vm3230_vm1 = vcmp.lt.s32.totalorder %v6543_v33, 6 }
 0x1c6   : > { %3125 = vmatprep.subr.bf16.mxu1 %v4560_v22 }
 0x1c8   : > { %3020 = vmatpush1.bf16.msra.mxu0 %v5380_v8  ;;  %v4564_v8 = vld [vmem:[%s6716_s4 + $0x104] ss:$8 sps:$4 sm:$0xff]  }
 0x1c9   : > { %3126 = vmatpush1.bf16.msra.mxu1 %v4561_v50  ;;  %3021 = vmatprep.subr.bf16.mxu0 %v5388_v10  ;;  %v4565_v10 = vld [vmem:[%s6716_s4 + $0x100] ss:$8 sps:$4 sm:$0xff]   ;;  %v3258_v50 = vsub.s32 0, %v6543_v33 }
 0x1ca   : > { %3127 = vmatprep.subr.bf16.mxu1 %v4562_v52  ;;  %v3262_v52 = vsub.s32 1, %v6543_v33 }
 0x1cc   : > { %3022 = vmatpush1.bf16.msra.mxu0 %v5396_v12  ;;  %v4566_v12 = vld [vmem:[%s6716_s4 + $0x114] ss:$8 sps:$4 sm:$0xff]  }
 0x1cd   : > { %3128 = vmatpush1.bf16.msra.mxu1 %v4563_v60  ;;  %3044 = vmatprep.subr.bf16.mxu0 %v5405_v16  ;;  %v4567_v16 = vld [vmem:[%s6716_s4 + $0x110] ss:$8 sps:$4 sm:$0xff]  }
 0x1ce   : > { %3150 = vmatprep.subr.bf16.mxu1 %v4564_v8 }
 0x1cf   : > { %3024 = vmatmul.mubr.bf16.vlgmr.msra.gmra.mrb[4].mxu0 %v5947_v15 }
 0x1d0   : > { %3130 = vmatmul.mubr.bf16.vlgmr.msra.gmra.mrb[12].mxu1 %v5420_v25  ;;  %3045 = vmatpush1.bf16.msra.mxu0 %v5429_v27  ;;  %v4568_v25 = vld [vmem:[%s6716_s4 + $0x124] ss:$8 sps:$4 sm:$0xff]   ;;  %v4569_v27 = vld [vmem:[%s6716_s4 + $0x120] ss:$8 sps:$4 sm:$0xff]  }
 0x1d1   : > { %3151 = vmatpush1.bf16.msra.mxu1 %v4565_v10  ;;  %3046 = vmatprep.subr.bf16.mxu0 %v5438_v14  ;;  %v4570_v14 = vld [vmem:[%s6716_s4 + $0x134] ss:$8 sps:$4 sm:$0xff]  }
 0x1d2   : > { %3152 = vmatprep.subr.bf16.mxu1 %v4566_v12  ;;  %3033 = vmatprep.mubr.bf16.mxu0 %v5963_v13 }
 0x1d3   : > { %3139 = vmatprep.mubr.bf16.mxu1 %v5443_v19  ;;  %v4571_v19 = vld [vmem:[%s6716_s4 + $0x130] ss:$8 sps:$4 sm:$0xff]  }
 0x1d4   : > { %3047 = vmatpush1.bf16.msra.mxu0 %v5451_v29  ;;  %v4572_v29 = vld [vmem:[%s6716_s4 + $0x144] ss:$8 sps:$4 sm:$0xff]  }
 0x1d5   : > { %3153 = vmatpush1.bf16.msra.mxu1 %v4567_v16  ;;  %3048 = vmatprep.subr.bf16.mxu0 %v5461_v31  ;;  %v4573_v31 = vld [vmem:[%s6716_s4 + $0x140] ss:$8 sps:$4 sm:$0xff]  }
 0x1d6   : > { %3154 = vmatprep.subr.bf16.mxu1 %v4568_v25 }
 0x1d7   : > { %3034 = vmatmul.mubr.bf16.gmra.mrb[8].mxu0 %v5981_v0 }
 0x1d8   : > { %3140 = vmatmul.mubr.bf16.gmra.mrb[16].mxu1 %v5470_v34  ;;  %3049 = vmatpush1.bf16.msra.mxu0 %v5479_v36  ;;  %v4574_v34 = vld [vmem:[%s6716_s4 + $0x154] ss:$8 sps:$4 sm:$0xff]  }
 0x1d9   : > { %3155 = vmatpush1.bf16.msra.mxu1 %v4569_v27  ;;  %3050 = vmatprep.subr.bf16.mxu0 %v5488_v38 }
 0x1da   : > { %3156 = vmatprep.subr.bf16.mxu1 %v4570_v14  ;;  %3076 = vmatprep.mubr.bf16.mxu0 %v6003_v24 }
 0x1db   : > { %3182 = vmatprep.mubr.bf16.mxu1 %v5503_v42  ;;  %v4575_v42 = vld [vmem:[%s6716_s4 + $0x150] ss:$8 sps:$4 sm:$0xff]  }
 0x1dc   : > { %3051 = vmatpush1.bf16.msra.mxu0 %v5496_v40 }
 0x1dd   : > { %3157 = vmatpush1.bf16.msra.mxu1 %v4571_v19  ;;  %3052 = vmatprep.subr.bf16.mxu0 %v5510_v43 }
 0x1de   : > { %3158 = vmatprep.subr.bf16.mxu1 %v4572_v29 }
 0x1e0   : > { %3053 = vmatpush1.bf16.msra.mxu0 %v5519_v45  ;;  %v4576_v45 = vld [vmem:[%s6716_s4 + $0x164] ss:$8 sps:$4 sm:$0xff]  }
 0x1e1   : > { %3159 = vmatpush1.bf16.msra.mxu1 %v4573_v31  ;;  %3054 = vmatprep.subr.bf16.mxu0 %v5529_v47  ;;  %v4577_v47 = vld [vmem:[%s6716_s4 + $0x160] ss:$8 sps:$4 sm:$0xff]  }
 0x1e2   : > { %3160 = vmatprep.subr.bf16.mxu1 %v4574_v34  ;;  %v6425_v36 = vpop.f32.mrb[0].mxu0 }
 0x1e3   : > { %v6427_v38 = vpop.f32.mrb[1].mxu0  ;;  %v3311_v0 = vrot.slane %v6425_v36, 1 }
 0x1e4   : > { %v1356_v40 = vpop.f32.mrb[2].mxu0  ;;  %3055 = vmatpush1.bf16.msra.mxu0 %v5539_v49  ;;  %v4578_v49 = vld [vmem:[%s6716_s4 + $0x174] ss:$8 sps:$4 sm:$0xff]  }
 0x1e5   : > { %3161 = vmatpush1.bf16.msra.mxu1 %v4575_v42  ;;  %v1357_v43 = vpop.f32.mrb[3].mxu0  ;;  %3056 = vmatprep.subr.bf16.mxu0 %v5548_v51  ;;  %v4579_v51 = vld [vmem:[%s6716_s4 + $0x170] ss:$8 sps:$4 sm:$0xff]   ;;  %v6568_v40 = vrot.slane %v386_v41, %v3258_v50 }
 0x1e6   : > { %3162 = vmatprep.subr.bf16.mxu1 %v4576_v45 }
 0x1e8   : > { %3057 = vmatpush1.bf16.msra.mxu0 %v5557_v53  ;;  %v4580_v53 = vld [vmem:[%s6716_s4 + $0x184] ss:$8 sps:$4 sm:$0xff]  }
 0x1e9   : > { %3163 = vmatpush1.bf16.msra.mxu1 %v4577_v47  ;;  %3058 = vmatprep.subr.bf16.mxu0 %v5566_v55  ;;  %v4581_v55 = vld [vmem:[%s6716_s4 + $0x180] ss:$8 sps:$4 sm:$0xff]  }
 0x1ea   : > { %3164 = vmatprep.subr.bf16.mxu1 %v4578_v49  ;;  %v6578_v49 = vrot.slane %v386_v41, %v3262_v52 }
 0x1ec   : > { %3059 = vmatpush1.bf16.msra.mxu0 %v5575_v57  ;;  %v4582_v57 = vld [vmem:[%s6716_s4 + $0x194] ss:$8 sps:$4 sm:$0xff]  }
 0x1ed   : > { %3165 = vmatpush1.bf16.msra.mxu1 %v4579_v51  ;;  %3060 = vmatprep.subr.bf16.mxu0 %v5584_v59  ;;  %v4583_v59 = vld [vmem:[%s6716_s4 + $0x190] ss:$8 sps:$4 sm:$0xff]  }
 0x1ee   : > { %3166 = vmatprep.subr.bf16.mxu1 %v4580_v53 }
 0x1f0   : > { %3061 = vmatpush1.bf16.msra.mxu0 %v5593_v61  ;;  %v4584_v61 = vld [vmem:[%s6716_s4 + $0x1a4] ss:$8 sps:$4 sm:$0xff]  }
 0x1f1   : > { %3167 = vmatpush1.bf16.msra.mxu1 %v4581_v55  ;;  %3062 = vmatprep.subr.bf16.mxu0 %v5602_v63  ;;  %v4585_v63 = vld [vmem:[%s6716_s4 + $0x1a0] ss:$8 sps:$4 sm:$0xff]  }
 0x1f2   : > { %3168 = vmatprep.subr.bf16.mxu1 %v4582_v57 }
 0x1f4   : > { %3063 = vmatpush1.bf16.msra.mxu0 %v5611_v1  ;;  %v4586_v1 = vld [vmem:[%s6716_s4 + $0x1b4] ss:$8 sps:$4 sm:$0xff]  }
 0x1f5   : > { %3169 = vmatpush1.bf16.msra.mxu1 %v4583_v59  ;;  %3064 = vmatprep.subr.bf16.mxu0 %v5620_v3  ;;  %v4587_v3 = vld [vmem:[%s6716_s4 + $0x1b0] ss:$8 sps:$4 sm:$0xff]  }
 0x1f6   : > { %3170 = vmatprep.subr.bf16.mxu1 %v4584_v61 }
 0x1f8   : > { %3065 = vmatpush1.bf16.msra.mxu0 %v5629_v5  ;;  %v4588_v5 = vld [vmem:[%s6716_s4 + $0x1c4] ss:$8 sps:$4 sm:$0xff]  }
 0x1f9   : > { %3171 = vmatpush1.bf16.msra.mxu1 %v4585_v63  ;;  %3066 = vmatprep.subr.bf16.mxu0 %v5638_v7  ;;  %v4589_v7 = vld [vmem:[%s6716_s4 + $0x1c0] ss:$8 sps:$4 sm:$0xff]  }
 0x1fa   : > { %3172 = vmatprep.subr.bf16.mxu1 %v4586_v1 }
 0x1fc   : > { %3067 = vmatpush1.bf16.msra.mxu0 %v5647_v11  ;;  %v4590_v11 = vld [vmem:[%s6716_s4 + $0x1d4] ss:$8 sps:$4 sm:$0xff]  }
 0x1fd   : > { %3173 = vmatpush1.bf16.msra.mxu1 %v4587_v3  ;;  %3068 = vmatprep.subr.bf16.mxu0 %v5656_v17  ;;  %v4591_v17 = vld [vmem:[%s6716_s4 + $0x1d0] ss:$8 sps:$4 sm:$0xff]  }
 0x1fe   : > { %3174 = vmatprep.subr.bf16.mxu1 %v4588_v5 }
 0x200   : > { %3069 = vmatpush1.bf16.msra.mxu0 %v5665_v21  ;;  %v4592_v21 = vld [vmem:[%s6716_s4 + $0x1e4] ss:$8 sps:$4 sm:$0xff]  }
 0x201   : > { %3175 = vmatpush1.bf16.msra.mxu1 %v4589_v7  ;;  %3070 = vmatprep.subr.bf16.mxu0 %v5674_v28  ;;  %v4593_v28 = vld [vmem:[%s6716_s4 + $0x1e0] ss:$8 sps:$4 sm:$0xff]  }
 0x202   : > { %3176 = vmatprep.subr.bf16.mxu1 %v4590_v11 }
 0x204   : > { %3071 = vmatpush1.bf16.msra.mxu0 %v5683_v20  ;;  %v4594_v20 = vld [vmem:[%s6716_s4 + $0x1f4] ss:$8 sps:$4 sm:$0xff]  }
 0x205   : > { %3177 = vmatpush1.bf16.msra.mxu1 %v4591_v17  ;;  %3072 = vmatprep.subr.bf16.mxu0 %v5692_v32  ;;  %v4595_v32 = vld [vmem:[%s6716_s4 + $0x1f0] ss:$8 sps:$4 sm:$0xff]  }
 0x206   : > { %3178 = vmatprep.subr.bf16.mxu1 %v4592_v21 }
 0x208   : > { %3073 = vmatpush1.bf16.msra.mxu0 %v5701_v39 }
 0x209   : > { %3179 = vmatpush1.bf16.msra.mxu1 %v4593_v28  ;;  %3074 = vmatprep.subr.bf16.mxu0 %v5710_v44 }
 0x20a   : > { %3180 = vmatprep.subr.bf16.mxu1 %v4594_v20 }
 0x20c   : > { %3075 = vmatpush1.bf16.msra.mxu0 %v5719_v48 }
 0x20d   : > { %3181 = vmatpush1.bf16.msra.mxu1 %v4595_v32 }
 0x20f   : > { %3077 = vmatmul.mubr.bf16.vlgmr.msra.gmra.mrb[4].mxu0 %v6168_v9 }
 0x210   : > { %3183 = vmatmul.mubr.bf16.vlgmr.msra.gmra.mrb[12].mxu1 %v5732_v56  ;;  %3086 = vmatprep.mubr.bf16.mxu0 %v6181_v23  ;;  %v3312_v56 = vrot.slane %v6427_v38, 1 }
 0x211   : > { %3192 = vmatprep.mubr.bf16.mxu1 %v5746_v26  ;;  %v3301_v26 = vrot.slane %v6045_v4, 2 }
 0x217   : > { %3087 = vmatmul.mubr.bf16.gmra.mrb[8].mxu0 %v6199_v46  ;;  %v3302_v46 = vrot.slane %v6047_v18, 2 }
 0x218   : > { %3193 = vmatmul.mubr.bf16.gmra.mrb[16].mxu1 %v5763_v6 }
 0x263   : > { %v2866_v39 = vpop.f32.mrb[4].mxu1 }
 0x264   : > { %v2868_v44 = vpop.f32.mrb[5].mxu1 }
 0x265   : > { %v6519_v48 = vpop.f32.mrb[6].mxu1 }
 0x266   : > { %v6521_v15 = vpop.f32.mrb[7].mxu1 }
 0x26b   : > { %v6523_v13 = vpop.f32.mrb[8].mxu1 }
 0x26c   : > { %v6526_v24 = vpop.f32.mrb[9].mxu1 }
 0x26d   : > { %v6529_v9 = vpop.f32.mrb[10].mxu1 }
 0x26e   : > { %v3315_v6 = vadd.f32 %v3311_v0, %v6529_v9  ;;  %v6533_v23 = vpop.f32.mrb[11].mxu1 }
 0x26f   : > { %v3316_v54 = vadd.f32 %v3312_v56, %v6533_v23 }
 0x270   : > { %v3317_v58 = vadd.f32 %v3315_v6, %v3301_v26 }
 0x271   : > { %v6541_v62 = vadd.f32 %v3316_v54, %v3302_v46 }
 0x272   : > { %v3319_v3 = vadd.f32 %v3317_v58, %v6568_v40 }
 0x2e2   : > { %v3078_v2 = vpop.f32.mrb[4].mxu0 }
 0x2e3   : > { %v6545_v30 = vpop.f32.mrb[12].mxu1  ;;  %v6550_v37 = vpop.f32.mrb[5].mxu0  ;;  %v3203_v10 = vrot.slane %v3078_v2, 1 }
 0x2e4   : > { %v6552_v22 = vpop.f32.mrb[13].mxu1  ;;  %v3082_v60 = vpop.f32.mrb[6].mxu0  ;;  %v3222_v12 = vrot.slane %v6545_v30, 2  ;;  %v3204_v19 = vrot.slane %v6550_v37, 1  ;;  %v3320_v37 = vadd.f32 %v6541_v62, %v6578_v49 }
 0x2e5   : > { %v3188_v8 = vpop.f32.mrb[14].mxu1  ;;  %v3205_v16 = vrot.slane %v3082_v60, 1  ;;  %v3084_v27 = vpop.f32.mrb[7].mxu0  ;;  %v3223_v29 = vrot.slane %v6552_v22, 2 }
 0x2e6   : > { %v3224_v25 = vrot.slane %v3188_v8, 2  ;;  %v3190_v14 = vpop.f32.mrb[15].mxu1  ;;  %v3206_v31 = vrot.slane %v3084_v27, 1  ;;  %v3330_v33 = vrot.slane %v3320_v37, 6 }
 0x2e7   : > { %v3225_v34 = vrot.slane %v3190_v14, 2  ;;  %v3218_v36 = vsel %vm3213_vm0, %v3203_v10, %v3205_v16 }
 0x2e8   : > { %v3235_v38 = vsel %vm3230_vm1, %v3222_v12, %v3224_v25  ;;  %v3239_v42 = vadd.f32 %v3218_v36, %v2866_v39  ;;  %v3219_v43 = vsel %vm3213_vm0, %v3204_v19, %v3206_v31 }
 0x2e9   : > { %v3236_v45 = vsel %vm3230_vm1, %v3223_v29, %v3225_v34  ;;  %v3240_v47 = vadd.f32 %v3219_v43, %v2868_v44 }
 0x2ea   : > { %v3247_v51 = vadd.f32 %v3239_v42, %v3235_v38  ;;  %v3088_v53 = vpop.f32.mrb[8].mxu0 }
 0x2eb   : > { %v3194_v55 = vpop.f32.mrb[16].mxu1  ;;  %v3248_v57 = vadd.f32 %v3240_v47, %v3236_v45  ;;  %v3207_v59 = vrot.slane %v3088_v53, 1  ;;  %v3090_v63 = vpop.f32.mrb[9].mxu0 }
 0x2ec   : > { %v3226_v61 = vrot.slane %v3194_v55, 2  ;;  %v3196_v1 = vpop.f32.mrb[17].mxu1  ;;  %v3266_v5 = vadd.f32 %v6568_v40, %v3247_v51  ;;  %v3208_v7 = vrot.slane %v3090_v63, 1  ;;  %v3092_v17 = vpop.f32.mrb[10].mxu0 }
 0x2ed   : > { %v3227_v11 = vrot.slane %v3196_v1, 2  ;;  %v3198_v21 = vpop.f32.mrb[18].mxu1  ;;  %v3267_v28 = vadd.f32 %v6578_v49, %v3248_v57  ;;  %v3216_v20 = vsel %vm3213_vm0, %v3205_v16, %v3207_v59  ;;  %v3209_v39 = vrot.slane %v3092_v17, 1  ;;  %v3094_v44 = vpop.f32.mrb[11].mxu0 }
 0x2ee   : > { %v3233_v32 = vsel %vm3230_vm1, %v3224_v25, %v3226_v61  ;;  %v3200_v0 = vpop.f32.mrb[19].mxu1  ;;  %v3274_v56 = vmax.f32 %v3266_v5, 0.0  ;;  %v3241_v6 = vadd.f32 %v3216_v20, %v6519_v48  ;;  %v3217_v54 = vsel %vm3213_vm0, %v3206_v31, %v3208_v7 }
 0x2ef   : > { %v3234_v58 = vsel %vm3230_vm1, %v3225_v34, %v3227_v11  ;;  %v3275_v35 = vmax.f32 %v3267_v28, 0.0  ;;  %v3242_v2 = vadd.f32 %v3217_v54, %v6521_v15  ;;  %v3214_v41 = vsel %vm3213_vm0, %v3207_v59, %v3209_v39 }
 0x2f0   : > { %v3220_v50 = vsel %vm3213_vm0, %v3209_v39, %v3203_v10  ;;  %3282 = vst [vmem:[%s6599_s16] sm:$0xff] %v3274_v56  ;;  %v3249_v48 = vadd.f32 %v3241_v6, %v3233_v32  ;;  %v3243_v52 = vadd.f32 %v3214_v41, %v6523_v13  ;;  %v3297_v8 = vadd.f32 %v3209_v39, %v6529_v9 }
 0x2f1   : > { %v3245_v60 = vadd.f32 %v3220_v50, %v6529_v9  ;;  %v3329_v16 = vrot.slane %v3319_v3, 6  ;;  %3284 = vst.msk [vmem:[%s6599_s16 + $0x8] sm:$0xff] %vm3283_vm2, %v3275_v35  ;;  %v3250_v15 = vadd.f32 %v3242_v2, %v3234_v58  ;;  %v3228_v25 = vrot.slane %v3198_v21, 2 }
 0x2f2   : > { %v3210_v27 = vrot.slane %v3094_v44, 1  ;;  %v3268_v10 = vadd.f32 %v6568_v40, %v3249_v48  ;;  %v3305_v14 = vadd.f32 %v3301_v26, %v3297_v8  ;;  %v3229_v31 = vrot.slane %v3200_v0, 2 }
 0x2f3   : > { %v3269_v13 = vadd.f32 %v6578_v49, %v3250_v15  ;;  %v3231_v34 = vsel %vm3230_vm1, %v3226_v61, %v3228_v25  ;;  %v3237_v9 = vsel %vm3230_vm1, %v3228_v25, %v3222_v12 }
 0x2f4   : > { %v3215_v36 = vsel %vm3213_vm0, %v3208_v7, %v3210_v27  ;;  %v3276_v38 = vmax.f32 %v3268_v10, 0.0  ;;  %v3307_v4 = vadd.f32 %v3305_v14, %v6568_v40  ;;  %v3251_v26 = vadd.f32 %v3243_v52, %v3231_v34 }
 0x2f5   : > { %v3253_v42 = vadd.f32 %v3245_v60, %v3237_v9  ;;  %v3277_v43 = vmax.f32 %v3269_v13, 0.0  ;;  %v3221_v45 = vsel %vm3213_vm0, %v3210_v27, %v3204_v19  ;;  %v3244_v30 = vadd.f32 %v3215_v36, %v6526_v24 }
 0x2f6   : > { %v3298_v47 = vadd.f32 %v3210_v27, %v6533_v23  ;;  %3285 = vst [vmem:[%s6599_s16 + $0x10] sm:$0xff] %v3276_v38  ;;  %v3323_v12 = vrot.slane %v3307_v4, 6  ;;  %v3270_v51 = vadd.f32 %v6568_v40, %v3251_v26  ;;  %v3246_v55 = vadd.f32 %v3221_v45, %v6533_v23 }
 0x2f7   : > { %v3272_v53 = vadd.f32 %v6568_v40, %v3253_v42  ;;  %3286 = vst.msk [vmem:[%s6599_s16 + $0x18] sm:$0xff] %vm3283_vm2, %v3277_v43  ;;  %v3232_v19 = vsel %vm3230_vm1, %v3227_v11, %v3229_v31  ;;  %v3238_v57 = vsel %vm3230_vm1, %v3229_v31, %v3223_v29 }
 0x2f8   : > { %v3306_v24 = vadd.f32 %v3302_v46, %v3298_v47  ;;  %v3334_v40 = vsel %vm3333_vm3, %v3323_v12, %v3329_v16  ;;  %v3278_v23 = vmax.f32 %v3270_v51, 0.0  ;;  %v3252_v59 = vadd.f32 %v3244_v30, %v3232_v19 }
 0x2f9   : > { %v3280_v62 = vmax.f32 %v3272_v53, 0.0  ;;  %v3336_v61 = vmax.f32 %v3334_v40, 0.0  ;;  %v3254_v46 = vadd.f32 %v3246_v55, %v3238_v57 }
 0x2fa   : > { %v3308_v18 = vadd.f32 %v3306_v24, %v6578_v49  ;;  %3287 = vst [vmem:[%s6599_s16 + $0x20] sm:$0xff] %v3278_v23  ;;  %v3271_v22 = vadd.f32 %v6578_v49, %v3252_v59 }
 0x2fb   : > { %3289 = vst [vmem:[%s6599_s16 + $0x30] sm:$0xff] %v3280_v62  ;;  %v3340_v29 = vrot.slane %v3336_v61, 2  ;;  %v3273_v1 = vadd.f32 %v6578_v49, %v3254_v46 }
 0x2fc   : > { %v3324_v63 = vrot.slane %v3308_v18, 6  ;;  %v3279_v3 = vmax.f32 %v3271_v22, 0.0 }
 0x2fd   : > { %3344 = vst [vmem:[%s6599_s16 + $0x30] sm:$0xc0] %v3340_v29  ;;  %v3281_v7 = vmax.f32 %v3273_v1, 0.0 }
 0x2fe   : > { %v3335_v5 = vsel %vm3333_vm3, %v3324_v63, %v3330_v33  ;;  %3288 = vst.msk [vmem:[%s6599_s16 + $0x28] sm:$0xff] %vm3283_vm2, %v3279_v3 }
 0x2ff   : > { %v3337_v11 = vmax.f32 %v3335_v5, 0.0  ;;  %3290 = vst.msk [vmem:[%s6599_s16 + $0x38] sm:$0xff] %vm3283_vm2, %v3281_v7 }
 0x301   : > { %v3341_v49 = vrot.slane %v3337_v11, 2 }
 0x303   : > { %3346 = vst.msk [vmem:[%s6599_s16 + $0x38] sm:$0xc0] %vm3345_vm4, %v3341_v49 }
 0x304   : > { %4609 = shalt.err (!%p4606_p5)
}
 0x305   : > { %s4610_s17 = scalar_lea.hbm %s6659_s30, 1024  ;;  %s4614_s18 = scalar_lea.hbm %s6718_s6, 2048 }
 0x306   : > { %p4611_p6 = scmp.ne.s32.totalorder %s6659_s30, %s4610_s17  ;;  %p4615_p10 = scmp.lt.u32.totalorder %s6659_s30, %s6718_s6 }
 0x307   : > { %p4616_p11 = scmp.lt.u32.totalorder %s4614_s18, %s4610_s17  ;;  %p4618_p13 = scmp.lt.u32.totalorder %s4610_s17, %s6659_s30 }
 0x308   : > { %p4612_p7 = pnand %p4611_p6, %p4754_p4 }
 0x309   : > { %p4617_p12 = por %p4616_p11, %p4615_p10 }
 0x30a   : > { %p4613_p9 = pneg %p4612_p7 }
 0x30b   : > { %p4619_p0 = por %p4618_p13, %p4617_p12 }
 0x30d   : > { %p4620_p1 = pnand %p4619_p0, %p4613_p9 }
 0x30f   : > { %4623 = shalt.err (!%p4620_p1)
}
 0x310   : > { %s4677_s27 = smov 256   ;;  %s4678_s20 = smov 16  }
 0x311   : > { %3901 = dma.vmem_to_hbm [thread:$0]  (%p4754_p4), %s6661_s28, 1024, %s6659_s30, %s6666_s24, %s4677_s27, %s4677_s27, %s4678_s20  }
 0x312 PF: > { %p3908_p2 = scmp.ge.s32.totalorder %s4674_s26, 2  ;;  %s3379_s8 = sand.u32 1, %s4654_s21  }
 0x313   : > { %s3380_s11 = scalar_lea.sflag [#allocation3], %s3379_s8 }
 0x314   : > { %p3904_p3 = pnand %p3908_p2, %p4761_p8 }
 0x316   : > { %4649 = dma.done.wait (!%p3904_p3), %s3380_s11, 1024  }
 0x317   : > { %4651 = vsyncadd (!%p3904_p3), %s3380_s11, 4294966272  ;;  %s19_s26 = sadd.s32 1, %s4674_s26   ;;  %s6721_s21 = smov %s4658_s22 }
 0x318   : > { %p16_p5 = scmp.ge.s32.totalorder %s19_s26, 4   ;;  %s6722_s22 = smov %s4662_s23 }
 0x319   : > { %s6723_s23 = smov %s4767_s10  ;;  %s6724_s24 = smov %s4670_s25 }
 0x31a   : > { %s6725_s25 = smov %s6727_s29  ;;  %18 = sbr.rel (!%p16_p5) target bundleno = 4 (0x4), region = 82 }
 0x321   :  { %3385 = vsyncpa [#allocation3], 1 }
 0x322   :  { %3387 = vsyncpa [#allocation3 + $0x1], 1 }

</bundles_post_ra>
